<compile_context>
chip_gen: v6e
topology: v6e:2x2x1
jax: 0.10.0
libtpu: 0.0.40
codegen_flags: <defaults>
</compile_context>

<pallas_src>
import jax
import jax.numpy as jnp
from jax.experimental import pallas as pl
from jax.experimental.pallas import tpu as pltpu


# --------------------------------------------------------------------------------------
# Kernel
# --------------------------------------------------------------------------------------
def _decoder_kernel(last_pos_ref, h_ref, c_ref, w2_ref, w_x_ref, bias_ref, out_ref):
    """Whole autoregressive decode runs in one kernel invocation (everything fits in VMEM).

    Inputs:
      last_pos_ref : (B, 2)            f32
      h_ref, c_ref : (1, B, H)         f32   (num_layers == 1; leading dim squeezed in-kernel)
      w2_ref       : (H, 4H + 128)     bf16  cols [0:4H]  = hh_w^T   (gate order i,f,o,g)
                                             cols [4H:4H+2] = hidden2pos weight^T, rest zero
      w_x_ref      : (2, 4H)           f32   fused spatial_embedding -> gate projection
      bias_ref     : (1, 4H + 128)     f32   [0:4H] fused gate bias, [4H:4H+2] hidden2pos bias
      out_ref      : (B, 2*pred_len)   f32   lane-packed positions (x0,y0,x1,y1,...)
    """
    batch = h_ref.shape[1]
    h_dim = h_ref.shape[2]
    g4 = 4 * h_dim
    pred_len = out_ref.shape[1] // 2

    # ---- loop-invariant values, hoisted (broadcast exactly once; JAX does not CSE these) ----
    wx0 = jnp.broadcast_to(w_x_ref[0:1, :], (batch, g4))          # (B, 4H) f32
    wx1 = jnp.broadcast_to(w_x_ref[1:2, :], (batch, g4))          # (B, 4H) f32
    b_gates = jnp.broadcast_to(bias_ref[0:1, 0:g4], (batch, g4))  # (B, 4H) f32
    b_pos = jnp.broadcast_to(bias_ref[0:1, g4:g4 + 2], (batch, 2))  # (B, 2) f32

    pos = last_pos_ref[...]                      # (B, 2) f32
    c = c_ref[0]                                 # (B, H) f32
    h_bf = h_ref[0].astype(jnp.bfloat16)         # h only ever feeds the MXU -> keep bf16

    # ---- prologue: contributions of (h_0, pos_0) to the step-0 gates ----
    # One combined dot: cols [0:4H] -> gate contribution, cols [4H:4H+2] -> hidden2pos (unused
    # in the prologue).  bf16 x bf16 -> f32 accumulate.
    z = jnp.dot(h_bf, w2_ref[...], preferred_element_type=jnp.float32)   # (B, 4H+128) f32
    gates_h = z[:, 0:g4]
    gates_x = pos[:, 0:1] * wx0 + pos[:, 1:2] * wx1                      # VPU broadcast-FMA

    # ---- fully-unrolled autoregressive decode (pred_len is small & static) ----
    for t in range(pred_len):
        gates = gates_x + gates_h + b_gates                              # (B, 4H) f32
        # gate order (i, f, o, g): one sigmoid over 3H lanes, one tanh over H lanes (all f32)
        sig = jax.nn.sigmoid(gates[:, 0:3 * h_dim])
        g_g = jnp.tanh(gates[:, 3 * h_dim:g4])
        i_g = sig[:, 0:h_dim]
        f_g = sig[:, h_dim:2 * h_dim]
        o_g = sig[:, 2 * h_dim:3 * h_dim]
        c = f_g * c + i_g * g_g
        h_bf = (o_g * jnp.tanh(c)).astype(jnp.bfloat16)

        # single MXU dot per step: next-step gate contribution + this step's position delta
        z = jnp.dot(h_bf, w2_ref[...], preferred_element_type=jnp.float32)
        pos = pos + z[:, g4:g4 + 2] + b_pos                              # residual update (f32)
        out_ref[:, 2 * t:2 * t + 2] = pos       # static lane offset, single-tile masked store

        if t + 1 < pred_len:                    # skip dead prep work on the last step
            gates_h = z[:, 0:g4]
            gates_x = pos[:, 0:1] * wx0 + pos[:, 1:2] * wx1


# --------------------------------------------------------------------------------------
# Wrapper
# --------------------------------------------------------------------------------------
def single_decoder_forward(c_context, h_traj, last_pos, packed, pred_len):
    """Mirrors Singel_Decoder.forward(c_context, h_traj, last_pos) -> (batch, pred_len, 2)."""
    batch = last_pos.shape[0]
    vmem = pl.BlockSpec(memory_space=pltpu.MemorySpace.VMEM)

    out = pl.pallas_call(
        _decoder_kernel,
        out_shape=jax.ShapeDtypeStruct((batch, pred_len * 2), jnp.float32),
        in_specs=[vmem] * 6,
        out_specs=vmem,
    )(last_pos, h_traj, c_context, packed["w2"], packed["w_x"], packed["bias"])

    # lane-packed (B, 2*T) -> (B, T, 2): contiguous row-major reshape (bitcast), no transpose.
    return out.reshape(batch, pred_len, 2)


# --------------------------------------------------------------------------------------
# Parameter construction (PyTorch layout) + packing for the kernel
# --------------------------------------------------------------------------------------
def make_raw_params(key, embedding_dim=64, h_dim=128):
    """Deterministic params in PyTorch layout: Linear weight (out, in), LSTM (4H, *)."""
    ks = jax.random.split(key, 8)
    s = 0.1
    n = jax.random.normal
    return {
        "emb_w": s * n(ks[0], (embedding_dim, 2), jnp.float32),            # nn.Linear(2, E)
        "emb_b": s * n(ks[1], (embedding_dim,), jnp.float32),
        "ih_w":  s * n(ks[2], (4 * h_dim, embedding_dim), jnp.float32),    # LSTM weight_ih_l0
        "ih_b":  s * n(ks[3], (4 * h_dim,), jnp.float32),
        "hh_w":  s * n(ks[4], (4 * h_dim, h_dim), jnp.float32),            # LSTM weight_hh_l0
        "hh_b":  s * n(ks[5], (4 * h_dim,), jnp.float32),
        "pos_w": s * n(ks[6], (2, h_dim), jnp.float32),                    # nn.Linear(H, 2)
        "pos_b": s * n(ks[7], (2,), jnp.float32),
    }


def pack_params(raw, h_dim=128):
    """Fold spatial_embedding into the LSTM input projection (exact: it is a bare Linear, no
    activation), permute gates to (i,f,o,g), append hidden2pos as extra bf16 columns of the
    recurrent weight, and keep the VPU-path pieces (w_x, biases) in f32."""
    def perm_ifog(a):            # leading 4H axis: PyTorch (i, f, g, o) -> (i, f, o, g)
        i, f, g, o = jnp.split(a, 4, axis=0)
        return jnp.concatenate([i, f, o, g], axis=0)

    ih_w = perm_ifog(raw["ih_w"])            # (4H, E)
    hh_w = perm_ifog(raw["hh_w"])            # (4H, H)
    ih_b = perm_ifog(raw["ih_b"])            # (4H,)
    hh_b = perm_ifog(raw["hh_b"])            # (4H,)
    g4 = 4 * h_dim

    # exact algebra: no nonlinearity between spatial_embedding and the LSTM input projection
    w_x = raw["emb_w"].T @ ih_w.T                              # (2, 4H)  f32 (VPU path)
    b_gates = raw["emb_b"] @ ih_w.T + ih_b + hh_b              # (4H,)    f32

    # combined MXU weight: [ hh_w^T | pos_w^T | 0-pad ] -> (H, 4H + 128), lane-tile aligned, bf16
    w2 = jnp.zeros((h_dim, g4 + 128), jnp.float32)
    w2 = w2.at[:, 0:g4].set(hh_w.T)
    w2 = w2.at[:, g4:g4 + 2].set(raw["pos_w"].T)
    w2 = w2.astype(jnp.bfloat16)

    bias = jnp.zeros((1, g4 + 128), jnp.float32)
    bias = bias.at[0, 0:g4].set(b_gates)
    bias = bias.at[0, g4:g4 + 2].set(raw["pos_b"])

    return {"w2": w2, "w_x": w_x, "bias": bias}


# --------------------------------------------------------------------------------------
# Pure-JAX reference (PyTorch math, unfused, original gate order, f32 everywhere)
# --------------------------------------------------------------------------------------
def _reference_forward(c_context, h_traj, last_pos, raw, pred_len):
    h, c = h_traj[0], c_context[0]
    H = h.shape[-1]
    pos = last_pos
    outs = []
    for _ in range(pred_len):
        x = pos @ raw["emb_w"].T + raw["emb_b"]
        gates = x @ raw["ih_w"].T + raw["ih_b"] + h @ raw["hh_w"].T + raw["hh_b"]
        i_g = jax.nn.sigmoid(gates[:, 0 * H:1 * H])
        f_g = jax.nn.sigmoid(gates[:, 1 * H:2 * H])
        g_g = jnp.tanh(gates[:, 2 * H:3 * H])
        o_g = jax.nn.sigmoid(gates[:, 3 * H:4 * H])
        c = f_g * c + i_g * g_g
        h = o_g * jnp.tanh(c)
        pos = h @ raw["pos_w"].T + raw["pos_b"] + pos
        outs.append(pos)
    return jnp.transpose(jnp.stack(outs, axis=0), (1, 0, 2))


if __name__ == "__main__":
    embedding_dim = 64
    h_dim = 128
    pred_len = 8            # cfg['model_params']['future_num_frames']
    batch = 8
    num_layers = 1

    key = jax.random.PRNGKey(0)
    k_p, k_h, k_c, k_x = jax.random.split(key, 4)

    raw = make_raw_params(k_p, embedding_dim, h_dim)
    packed = pack_params(raw, h_dim)

    h_traj = 0.1 * jax.random.normal(k_h, (num_layers, batch, h_dim), jnp.float32)
    c_context = 0.1 * jax.random.normal(k_c, (num_layers, batch, h_dim), jnp.float32)
    last_pos = jax.random.normal(k_x, (batch, 2), jnp.float32)

    out = single_decoder_forward(c_context, h_traj, last_pos, packed, pred_len)
    out = jax.block_until_ready(out)
    assert out.shape == (batch, pred_len, 2)

    # bf16 MXU inputs (weights + h at the dot boundary) vs an all-f32 reference: tolerance
    # loosened from 1e-3 to 1e-2 to cover per-step rounding amplified by the residual recurrence.
    ref = _reference_forward(c_context, h_traj, last_pos, raw, pred_len)
    assert jnp.allclose(out, ref, rtol=1e-2, atol=1e-2), "mismatch vs pure-JAX reference"

    print("KERNEL_OK")
</pallas_src>

<mosaic_0001>
module attributes {stable_mosaic.version = 11 : i64} {
  func.func @_decoder_kernel(%arg0: memref<8x2xf32, #tpu.memory_space<vmem>>, %arg1: memref<1x8x128xf32, #tpu.memory_space<vmem>>, %arg2: memref<1x8x128xf32, #tpu.memory_space<vmem>>, %arg3: memref<128x640xbf16, #tpu.memory_space<vmem>>, %arg4: memref<2x512xf32, #tpu.memory_space<vmem>>, %arg5: memref<1x640xf32, #tpu.memory_space<vmem>>, %arg6: memref<8x16xf32, #tpu.memory_space<vmem>>) attributes {dimension_semantics = [], scalar_prefetch = 0 : i64, scratch_operands = 0 : i64, tpu.core_type = #tpu.core_type<tc>} {
    %c0 = arith.constant 0 : index
    %c0_0 = arith.constant 0 : index
    %0 = vector.load %arg4[%c0, %c0_0] : memref<2x512xf32, #tpu.memory_space<vmem>>, vector<1x512xf32>
    %1 = vector.shape_cast %0 : vector<1x512xf32> to vector<1x512xf32>
    %2 = vector.broadcast %1 : vector<1x512xf32> to vector<8x512xf32>
    %c1 = arith.constant 1 : index
    %c0_1 = arith.constant 0 : index
    %3 = vector.load %arg4[%c1, %c0_1] : memref<2x512xf32, #tpu.memory_space<vmem>>, vector<1x512xf32>
    %4 = vector.shape_cast %3 : vector<1x512xf32> to vector<1x512xf32>
    %5 = vector.broadcast %4 : vector<1x512xf32> to vector<8x512xf32>
    %c0_2 = arith.constant 0 : index
    %c0_3 = arith.constant 0 : index
    %6 = vector.load %arg5[%c0_2, %c0_3] : memref<1x640xf32, #tpu.memory_space<vmem>>, vector<1x512xf32>
    %7 = vector.shape_cast %6 : vector<1x512xf32> to vector<1x512xf32>
    %8 = vector.broadcast %7 : vector<1x512xf32> to vector<8x512xf32>
    %c0_4 = arith.constant 0 : index
    %c512 = arith.constant 512 : index
    %9 = vector.load %arg5[%c0_4, %c512] : memref<1x640xf32, #tpu.memory_space<vmem>>, vector<1x2xf32>
    %10 = vector.shape_cast %9 : vector<1x2xf32> to vector<1x2xf32>
    %11 = vector.broadcast %10 : vector<1x2xf32> to vector<8x2xf32>
    %c0_5 = arith.constant 0 : index
    %c0_6 = arith.constant 0 : index
    %12 = vector.load %arg0[%c0_5, %c0_6] : memref<8x2xf32, #tpu.memory_space<vmem>>, vector<8x2xf32>
    %c0_7 = arith.constant 0 : index
    %c0_8 = arith.constant 0 : index
    %c0_9 = arith.constant 0 : index
    %13 = vector.load %arg2[%c0_7, %c0_8, %c0_9] : memref<1x8x128xf32, #tpu.memory_space<vmem>>, vector<1x8x128xf32>
    %14 = vector.shape_cast %13 : vector<1x8x128xf32> to vector<8x128xf32>
    %c0_10 = arith.constant 0 : index
    %c0_11 = arith.constant 0 : index
    %c0_12 = arith.constant 0 : index
    %15 = vector.load %arg1[%c0_10, %c0_11, %c0_12] : memref<1x8x128xf32, #tpu.memory_space<vmem>>, vector<1x8x128xf32>
    %16 = vector.shape_cast %15 : vector<1x8x128xf32> to vector<8x128xf32>
    %17 = arith.truncf %16 : vector<8x128xf32> to vector<8x128xbf16>
    %c0_13 = arith.constant 0 : index
    %c0_14 = arith.constant 0 : index
    %18 = vector.load %arg3[%c0_13, %c0_14] : memref<128x640xbf16, #tpu.memory_space<vmem>>, vector<128x640xbf16>
    %cst = arith.constant dense<0.000000e+00> : vector<8x640xf32>
    %19 = tpu.matmul %17, %18, %cst {dimension_numbers = #tpu.dot_dimension_numbers<[1], [0], [0], [1], [0, 0, 1, 1], [], []>} : vector<8x128xbf16>, vector<128x640xbf16>, vector<8x640xf32> -> vector<8x640xf32>
    %20 = vector.extract_strided_slice %19 {offsets = [0, 0], sizes = [8, 512], strides = [1, 1]} : vector<8x640xf32> to vector<8x512xf32>
    %21 = vector.extract_strided_slice %12 {offsets = [0, 0], sizes = [8, 1], strides = [1, 1]} : vector<8x2xf32> to vector<8x1xf32>
    %22 = vector.broadcast %21 : vector<8x1xf32> to vector<8x512xf32>
    %23 = arith.mulf %22, %2 : vector<8x512xf32>
    %24 = vector.extract_strided_slice %12 {offsets = [0, 1], sizes = [8, 1], strides = [1, 1]} : vector<8x2xf32> to vector<8x1xf32>
    %25 = vector.broadcast %24 : vector<8x1xf32> to vector<8x512xf32>
    %26 = arith.mulf %25, %5 : vector<8x512xf32>
    %27 = arith.addf %23, %26 : vector<8x512xf32>
    %28 = arith.addf %27, %20 : vector<8x512xf32>
    %29 = arith.addf %28, %8 : vector<8x512xf32>
    %30 = vector.extract_strided_slice %29 {offsets = [0, 0], sizes = [8, 384], strides = [1, 1]} : vector<8x512xf32> to vector<8x384xf32>
    %31 = arith.negf %30 : vector<8x384xf32>
    %32 = math.exp %31 : vector<8x384xf32>
    %cst_15 = arith.constant 1.000000e+00 : f32
    %33 = vector.broadcast %cst_15 : f32 to vector<8x384xf32>
    %34 = arith.addf %33, %32 : vector<8x384xf32>
    %35 = arith.divf %33, %34 : vector<8x384xf32>
    %36 = vector.extract_strided_slice %29 {offsets = [0, 384], sizes = [8, 128], strides = [1, 1]} : vector<8x512xf32> to vector<8x128xf32>
    %37 = math.tanh %36 : vector<8x128xf32>
    %38 = vector.extract_strided_slice %35 {offsets = [0, 0], sizes = [8, 128], strides = [1, 1]} : vector<8x384xf32> to vector<8x128xf32>
    %39 = vector.extract_strided_slice %35 {offsets = [0, 128], sizes = [8, 128], strides = [1, 1]} : vector<8x384xf32> to vector<8x128xf32>
    %40 = vector.extract_strided_slice %35 {offsets = [0, 256], sizes = [8, 128], strides = [1, 1]} : vector<8x384xf32> to vector<8x128xf32>
    %41 = arith.mulf %39, %14 : vector<8x128xf32>
    %42 = arith.mulf %38, %37 : vector<8x128xf32>
    %43 = arith.addf %41, %42 : vector<8x128xf32>
    %44 = math.tanh %43 : vector<8x128xf32>
    %45 = arith.mulf %40, %44 : vector<8x128xf32>
    %46 = arith.truncf %45 : vector<8x128xf32> to vector<8x128xbf16>
    %c0_16 = arith.constant 0 : index
    %c0_17 = arith.constant 0 : index
    %47 = vector.load %arg3[%c0_16, %c0_17] : memref<128x640xbf16, #tpu.memory_space<vmem>>, vector<128x640xbf16>
    %cst_18 = arith.constant dense<0.000000e+00> : vector<8x640xf32>
    %48 = tpu.matmul %46, %47, %cst_18 {dimension_numbers = #tpu.dot_dimension_numbers<[1], [0], [0], [1], [0, 0, 1, 1], [], []>} : vector<8x128xbf16>, vector<128x640xbf16>, vector<8x640xf32> -> vector<8x640xf32>
    %49 = vector.extract_strided_slice %48 {offsets = [0, 512], sizes = [8, 2], strides = [1, 1]} : vector<8x640xf32> to vector<8x2xf32>
    %50 = arith.addf %12, %49 : vector<8x2xf32>
    %51 = arith.addf %50, %11 : vector<8x2xf32>
    %c0_19 = arith.constant 0 : index
    %c0_20 = arith.constant 0 : index
    %52 = vector.load %arg6[%c0_19, %c0_20] : memref<8x16xf32, #tpu.memory_space<vmem>>, vector<8x2xf32>
    tpu.vector_store %arg6[%c0_19, %c0_20], %51 {strides = array<i32>} : memref<8x16xf32, #tpu.memory_space<vmem>>, vector<8x2xf32>,
    %53 = vector.extract_strided_slice %48 {offsets = [0, 0], sizes = [8, 512], strides = [1, 1]} : vector<8x640xf32> to vector<8x512xf32>
    %54 = vector.extract_strided_slice %51 {offsets = [0, 0], sizes = [8, 1], strides = [1, 1]} : vector<8x2xf32> to vector<8x1xf32>
    %55 = vector.broadcast %54 : vector<8x1xf32> to vector<8x512xf32>
    %56 = arith.mulf %55, %2 : vector<8x512xf32>
    %57 = vector.extract_strided_slice %51 {offsets = [0, 1], sizes = [8, 1], strides = [1, 1]} : vector<8x2xf32> to vector<8x1xf32>
    %58 = vector.broadcast %57 : vector<8x1xf32> to vector<8x512xf32>
    %59 = arith.mulf %58, %5 : vector<8x512xf32>
    %60 = arith.addf %56, %59 : vector<8x512xf32>
    %61 = arith.addf %60, %53 : vector<8x512xf32>
    %62 = arith.addf %61, %8 : vector<8x512xf32>
    %63 = vector.extract_strided_slice %62 {offsets = [0, 0], sizes = [8, 384], strides = [1, 1]} : vector<8x512xf32> to vector<8x384xf32>
    %64 = arith.negf %63 : vector<8x384xf32>
    %65 = math.exp %64 : vector<8x384xf32>
    %cst_21 = arith.constant 1.000000e+00 : f32
    %66 = vector.broadcast %cst_21 : f32 to vector<8x384xf32>
    %67 = arith.addf %66, %65 : vector<8x384xf32>
    %68 = arith.divf %66, %67 : vector<8x384xf32>
    %69 = vector.extract_strided_slice %62 {offsets = [0, 384], sizes = [8, 128], strides = [1, 1]} : vector<8x512xf32> to vector<8x128xf32>
    %70 = math.tanh %69 : vector<8x128xf32>
    %71 = vector.extract_strided_slice %68 {offsets = [0, 0], sizes = [8, 128], strides = [1, 1]} : vector<8x384xf32> to vector<8x128xf32>
    %72 = vector.extract_strided_slice %68 {offsets = [0, 128], sizes = [8, 128], strides = [1, 1]} : vector<8x384xf32> to vector<8x128xf32>
    %73 = vector.extract_strided_slice %68 {offsets = [0, 256], sizes = [8, 128], strides = [1, 1]} : vector<8x384xf32> to vector<8x128xf32>
    %74 = arith.mulf %72, %43 : vector<8x128xf32>
    %75 = arith.mulf %71, %70 : vector<8x128xf32>
    %76 = arith.addf %74, %75 : vector<8x128xf32>
    %77 = math.tanh %76 : vector<8x128xf32>
    %78 = arith.mulf %73, %77 : vector<8x128xf32>
    %79 = arith.truncf %78 : vector<8x128xf32> to vector<8x128xbf16>
    %c0_22 = arith.constant 0 : index
    %c0_23 = arith.constant 0 : index
    %80 = vector.load %arg3[%c0_22, %c0_23] : memref<128x640xbf16, #tpu.memory_space<vmem>>, vector<128x640xbf16>
    %cst_24 = arith.constant dense<0.000000e+00> : vector<8x640xf32>
    %81 = tpu.matmul %79, %80, %cst_24 {dimension_numbers = #tpu.dot_dimension_numbers<[1], [0], [0], [1], [0, 0, 1, 1], [], []>} : vector<8x128xbf16>, vector<128x640xbf16>, vector<8x640xf32> -> vector<8x640xf32>
    %82 = vector.extract_strided_slice %81 {offsets = [0, 512], sizes = [8, 2], strides = [1, 1]} : vector<8x640xf32> to vector<8x2xf32>
    %83 = arith.addf %51, %82 : vector<8x2xf32>
    %84 = arith.addf %83, %11 : vector<8x2xf32>
    %c0_25 = arith.constant 0 : index
    %c2 = arith.constant 2 : index
    %85 = vector.load %arg6[%c0_25, %c2] : memref<8x16xf32, #tpu.memory_space<vmem>>, vector<8x2xf32>
    tpu.vector_store %arg6[%c0_25, %c2], %84 {strides = array<i32>} : memref<8x16xf32, #tpu.memory_space<vmem>>, vector<8x2xf32>,
    %86 = vector.extract_strided_slice %81 {offsets = [0, 0], sizes = [8, 512], strides = [1, 1]} : vector<8x640xf32> to vector<8x512xf32>
    %87 = vector.extract_strided_slice %84 {offsets = [0, 0], sizes = [8, 1], strides = [1, 1]} : vector<8x2xf32> to vector<8x1xf32>
    %88 = vector.broadcast %87 : vector<8x1xf32> to vector<8x512xf32>
    %89 = arith.mulf %88, %2 : vector<8x512xf32>
    %90 = vector.extract_strided_slice %84 {offsets = [0, 1], sizes = [8, 1], strides = [1, 1]} : vector<8x2xf32> to vector<8x1xf32>
    %91 = vector.broadcast %90 : vector<8x1xf32> to vector<8x512xf32>
    %92 = arith.mulf %91, %5 : vector<8x512xf32>
    %93 = arith.addf %89, %92 : vector<8x512xf32>
    %94 = arith.addf %93, %86 : vector<8x512xf32>
    %95 = arith.addf %94, %8 : vector<8x512xf32>
    %96 = vector.extract_strided_slice %95 {offsets = [0, 0], sizes = [8, 384], strides = [1, 1]} : vector<8x512xf32> to vector<8x384xf32>
    %97 = arith.negf %96 : vector<8x384xf32>
    %98 = math.exp %97 : vector<8x384xf32>
    %cst_26 = arith.constant 1.000000e+00 : f32
    %99 = vector.broadcast %cst_26 : f32 to vector<8x384xf32>
    %100 = arith.addf %99, %98 : vector<8x384xf32>
    %101 = arith.divf %99, %100 : vector<8x384xf32>
    %102 = vector.extract_strided_slice %95 {offsets = [0, 384], sizes = [8, 128], strides = [1, 1]} : vector<8x512xf32> to vector<8x128xf32>
    %103 = math.tanh %102 : vector<8x128xf32>
    %104 = vector.extract_strided_slice %101 {offsets = [0, 0], sizes = [8, 128], strides = [1, 1]} : vector<8x384xf32> to vector<8x128xf32>
    %105 = vector.extract_strided_slice %101 {offsets = [0, 128], sizes = [8, 128], strides = [1, 1]} : vector<8x384xf32> to vector<8x128xf32>
    %106 = vector.extract_strided_slice %101 {offsets = [0, 256], sizes = [8, 128], strides = [1, 1]} : vector<8x384xf32> to vector<8x128xf32>
    %107 = arith.mulf %105, %76 : vector<8x128xf32>
    %108 = arith.mulf %104, %103 : vector<8x128xf32>
    %109 = arith.addf %107, %108 : vector<8x128xf32>
    %110 = math.tanh %109 : vector<8x128xf32>
    %111 = arith.mulf %106, %110 : vector<8x128xf32>
    %112 = arith.truncf %111 : vector<8x128xf32> to vector<8x128xbf16>
    %c0_27 = arith.constant 0 : index
    %c0_28 = arith.constant 0 : index
    %113 = vector.load %arg3[%c0_27, %c0_28] : memref<128x640xbf16, #tpu.memory_space<vmem>>, vector<128x640xbf16>
    %cst_29 = arith.constant dense<0.000000e+00> : vector<8x640xf32>
    %114 = tpu.matmul %112, %113, %cst_29 {dimension_numbers = #tpu.dot_dimension_numbers<[1], [0], [0], [1], [0, 0, 1, 1], [], []>} : vector<8x128xbf16>, vector<128x640xbf16>, vector<8x640xf32> -> vector<8x640xf32>
    %115 = vector.extract_strided_slice %114 {offsets = [0, 512], sizes = [8, 2], strides = [1, 1]} : vector<8x640xf32> to vector<8x2xf32>
    %116 = arith.addf %84, %115 : vector<8x2xf32>
    %117 = arith.addf %116, %11 : vector<8x2xf32>
    %c0_30 = arith.constant 0 : index
    %c4 = arith.constant 4 : index
    %118 = vector.load %arg6[%c0_30, %c4] : memref<8x16xf32, #tpu.memory_space<vmem>>, vector<8x2xf32>
    tpu.vector_store %arg6[%c0_30, %c4], %117 {strides = array<i32>} : memref<8x16xf32, #tpu.memory_space<vmem>>, vector<8x2xf32>,
    %119 = vector.extract_strided_slice %114 {offsets = [0, 0], sizes = [8, 512], strides = [1, 1]} : vector<8x640xf32> to vector<8x512xf32>
    %120 = vector.extract_strided_slice %117 {offsets = [0, 0], sizes = [8, 1], strides = [1, 1]} : vector<8x2xf32> to vector<8x1xf32>
    %121 = vector.broadcast %120 : vector<8x1xf32> to vector<8x512xf32>
    %122 = arith.mulf %121, %2 : vector<8x512xf32>
    %123 = vector.extract_strided_slice %117 {offsets = [0, 1], sizes = [8, 1], strides = [1, 1]} : vector<8x2xf32> to vector<8x1xf32>
    %124 = vector.broadcast %123 : vector<8x1xf32> to vector<8x512xf32>
    %125 = arith.mulf %124, %5 : vector<8x512xf32>
    %126 = arith.addf %122, %125 : vector<8x512xf32>
    %127 = arith.addf %126, %119 : vector<8x512xf32>
    %128 = arith.addf %127, %8 : vector<8x512xf32>
    %129 = vector.extract_strided_slice %128 {offsets = [0, 0], sizes = [8, 384], strides = [1, 1]} : vector<8x512xf32> to vector<8x384xf32>
    %130 = arith.negf %129 : vector<8x384xf32>
    %131 = math.exp %130 : vector<8x384xf32>
    %cst_31 = arith.constant 1.000000e+00 : f32
    %132 = vector.broadcast %cst_31 : f32 to vector<8x384xf32>
    %133 = arith.addf %132, %131 : vector<8x384xf32>
    %134 = arith.divf %132, %133 : vector<8x384xf32>
    %135 = vector.extract_strided_slice %128 {offsets = [0, 384], sizes = [8, 128], strides = [1, 1]} : vector<8x512xf32> to vector<8x128xf32>
    %136 = math.tanh %135 : vector<8x128xf32>
    %137 = vector.extract_strided_slice %134 {offsets = [0, 0], sizes = [8, 128], strides = [1, 1]} : vector<8x384xf32> to vector<8x128xf32>
    %138 = vector.extract_strided_slice %134 {offsets = [0, 128], sizes = [8, 128], strides = [1, 1]} : vector<8x384xf32> to vector<8x128xf32>
    %139 = vector.extract_strided_slice %134 {offsets = [0, 256], sizes = [8, 128], strides = [1, 1]} : vector<8x384xf32> to vector<8x128xf32>
    %140 = arith.mulf %138, %109 : vector<8x128xf32>
    %141 = arith.mulf %137, %136 : vector<8x128xf32>
    %142 = arith.addf %140, %141 : vector<8x128xf32>
    %143 = math.tanh %142 : vector<8x128xf32>
    %144 = arith.mulf %139, %143 : vector<8x128xf32>
    %145 = arith.truncf %144 : vector<8x128xf32> to vector<8x128xbf16>
    %c0_32 = arith.constant 0 : index
    %c0_33 = arith.constant 0 : index
    %146 = vector.load %arg3[%c0_32, %c0_33] : memref<128x640xbf16, #tpu.memory_space<vmem>>, vector<128x640xbf16>
    %cst_34 = arith.constant dense<0.000000e+00> : vector<8x640xf32>
    %147 = tpu.matmul %145, %146, %cst_34 {dimension_numbers = #tpu.dot_dimension_numbers<[1], [0], [0], [1], [0, 0, 1, 1], [], []>} : vector<8x128xbf16>, vector<128x640xbf16>, vector<8x640xf32> -> vector<8x640xf32>
    %148 = vector.extract_strided_slice %147 {offsets = [0, 512], sizes = [8, 2], strides = [1, 1]} : vector<8x640xf32> to vector<8x2xf32>
    %149 = arith.addf %117, %148 : vector<8x2xf32>
    %150 = arith.addf %149, %11 : vector<8x2xf32>
    %c0_35 = arith.constant 0 : index
    %c6 = arith.constant 6 : index
    %151 = vector.load %arg6[%c0_35, %c6] : memref<8x16xf32, #tpu.memory_space<vmem>>, vector<8x2xf32>
    tpu.vector_store %arg6[%c0_35, %c6], %150 {strides = array<i32>} : memref<8x16xf32, #tpu.memory_space<vmem>>, vector<8x2xf32>,
    %152 = vector.extract_strided_slice %147 {offsets = [0, 0], sizes = [8, 512], strides = [1, 1]} : vector<8x640xf32> to vector<8x512xf32>
    %153 = vector.extract_strided_slice %150 {offsets = [0, 0], sizes = [8, 1], strides = [1, 1]} : vector<8x2xf32> to vector<8x1xf32>
    %154 = vector.broadcast %153 : vector<8x1xf32> to vector<8x512xf32>
    %155 = arith.mulf %154, %2 : vector<8x512xf32>
    %156 = vector.extract_strided_slice %150 {offsets = [0, 1], sizes = [8, 1], strides = [1, 1]} : vector<8x2xf32> to vector<8x1xf32>
    %157 = vector.broadcast %156 : vector<8x1xf32> to vector<8x512xf32>
    %158 = arith.mulf %157, %5 : vector<8x512xf32>
    %159 = arith.addf %155, %158 : vector<8x512xf32>
    %160 = arith.addf %159, %152 : vector<8x512xf32>
    %161 = arith.addf %160, %8 : vector<8x512xf32>
    %162 = vector.extract_strided_slice %161 {offsets = [0, 0], sizes = [8, 384], strides = [1, 1]} : vector<8x512xf32> to vector<8x384xf32>
    %163 = arith.negf %162 : vector<8x384xf32>
    %164 = math.exp %163 : vector<8x384xf32>
    %cst_36 = arith.constant 1.000000e+00 : f32
    %165 = vector.broadcast %cst_36 : f32 to vector<8x384xf32>
    %166 = arith.addf %165, %164 : vector<8x384xf32>
    %167 = arith.divf %165, %166 : vector<8x384xf32>
    %168 = vector.extract_strided_slice %161 {offsets = [0, 384], sizes = [8, 128], strides = [1, 1]} : vector<8x512xf32> to vector<8x128xf32>
    %169 = math.tanh %168 : vector<8x128xf32>
    %170 = vector.extract_strided_slice %167 {offsets = [0, 0], sizes = [8, 128], strides = [1, 1]} : vector<8x384xf32> to vector<8x128xf32>
    %171 = vector.extract_strided_slice %167 {offsets = [0, 128], sizes = [8, 128], strides = [1, 1]} : vector<8x384xf32> to vector<8x128xf32>
    %172 = vector.extract_strided_slice %167 {offsets = [0, 256], sizes = [8, 128], strides = [1, 1]} : vector<8x384xf32> to vector<8x128xf32>
    %173 = arith.mulf %171, %142 : vector<8x128xf32>
    %174 = arith.mulf %170, %169 : vector<8x128xf32>
    %175 = arith.addf %173, %174 : vector<8x128xf32>
    %176 = math.tanh %175 : vector<8x128xf32>
    %177 = arith.mulf %172, %176 : vector<8x128xf32>
    %178 = arith.truncf %177 : vector<8x128xf32> to vector<8x128xbf16>
    %c0_37 = arith.constant 0 : index
    %c0_38 = arith.constant 0 : index
    %179 = vector.load %arg3[%c0_37, %c0_38] : memref<128x640xbf16, #tpu.memory_space<vmem>>, vector<128x640xbf16>
    %cst_39 = arith.constant dense<0.000000e+00> : vector<8x640xf32>
    %180 = tpu.matmul %178, %179, %cst_39 {dimension_numbers = #tpu.dot_dimension_numbers<[1], [0], [0], [1], [0, 0, 1, 1], [], []>} : vector<8x128xbf16>, vector<128x640xbf16>, vector<8x640xf32> -> vector<8x640xf32>
    %181 = vector.extract_strided_slice %180 {offsets = [0, 512], sizes = [8, 2], strides = [1, 1]} : vector<8x640xf32> to vector<8x2xf32>
    %182 = arith.addf %150, %181 : vector<8x2xf32>
    %183 = arith.addf %182, %11 : vector<8x2xf32>
    %c0_40 = arith.constant 0 : index
    %c8 = arith.constant 8 : index
    %184 = vector.load %arg6[%c0_40, %c8] : memref<8x16xf32, #tpu.memory_space<vmem>>, vector<8x2xf32>
    tpu.vector_store %arg6[%c0_40, %c8], %183 {strides = array<i32>} : memref<8x16xf32, #tpu.memory_space<vmem>>, vector<8x2xf32>,
    %185 = vector.extract_strided_slice %180 {offsets = [0, 0], sizes = [8, 512], strides = [1, 1]} : vector<8x640xf32> to vector<8x512xf32>
    %186 = vector.extract_strided_slice %183 {offsets = [0, 0], sizes = [8, 1], strides = [1, 1]} : vector<8x2xf32> to vector<8x1xf32>
    %187 = vector.broadcast %186 : vector<8x1xf32> to vector<8x512xf32>
    %188 = arith.mulf %187, %2 : vector<8x512xf32>
    %189 = vector.extract_strided_slice %183 {offsets = [0, 1], sizes = [8, 1], strides = [1, 1]} : vector<8x2xf32> to vector<8x1xf32>
    %190 = vector.broadcast %189 : vector<8x1xf32> to vector<8x512xf32>
    %191 = arith.mulf %190, %5 : vector<8x512xf32>
    %192 = arith.addf %188, %191 : vector<8x512xf32>
    %193 = arith.addf %192, %185 : vector<8x512xf32>
    %194 = arith.addf %193, %8 : vector<8x512xf32>
    %195 = vector.extract_strided_slice %194 {offsets = [0, 0], sizes = [8, 384], strides = [1, 1]} : vector<8x512xf32> to vector<8x384xf32>
    %196 = arith.negf %195 : vector<8x384xf32>
    %197 = math.exp %196 : vector<8x384xf32>
    %cst_41 = arith.constant 1.000000e+00 : f32
    %198 = vector.broadcast %cst_41 : f32 to vector<8x384xf32>
    %199 = arith.addf %198, %197 : vector<8x384xf32>
    %200 = arith.divf %198, %199 : vector<8x384xf32>
    %201 = vector.extract_strided_slice %194 {offsets = [0, 384], sizes = [8, 128], strides = [1, 1]} : vector<8x512xf32> to vector<8x128xf32>
    %202 = math.tanh %201 : vector<8x128xf32>
    %203 = vector.extract_strided_slice %200 {offsets = [0, 0], sizes = [8, 128], strides = [1, 1]} : vector<8x384xf32> to vector<8x128xf32>
    %204 = vector.extract_strided_slice %200 {offsets = [0, 128], sizes = [8, 128], strides = [1, 1]} : vector<8x384xf32> to vector<8x128xf32>
    %205 = vector.extract_strided_slice %200 {offsets = [0, 256], sizes = [8, 128], strides = [1, 1]} : vector<8x384xf32> to vector<8x128xf32>
    %206 = arith.mulf %204, %175 : vector<8x128xf32>
    %207 = arith.mulf %203, %202 : vector<8x128xf32>
    %208 = arith.addf %206, %207 : vector<8x128xf32>
    %209 = math.tanh %208 : vector<8x128xf32>
    %210 = arith.mulf %205, %209 : vector<8x128xf32>
    %211 = arith.truncf %210 : vector<8x128xf32> to vector<8x128xbf16>
    %c0_42 = arith.constant 0 : index
    %c0_43 = arith.constant 0 : index
    %212 = vector.load %arg3[%c0_42, %c0_43] : memref<128x640xbf16, #tpu.memory_space<vmem>>, vector<128x640xbf16>
    %cst_44 = arith.constant dense<0.000000e+00> : vector<8x640xf32>
    %213 = tpu.matmul %211, %212, %cst_44 {dimension_numbers = #tpu.dot_dimension_numbers<[1], [0], [0], [1], [0, 0, 1, 1], [], []>} : vector<8x128xbf16>, vector<128x640xbf16>, vector<8x640xf32> -> vector<8x640xf32>
    %214 = vector.extract_strided_slice %213 {offsets = [0, 512], sizes = [8, 2], strides = [1, 1]} : vector<8x640xf32> to vector<8x2xf32>
    %215 = arith.addf %183, %214 : vector<8x2xf32>
    %216 = arith.addf %215, %11 : vector<8x2xf32>
    %c0_45 = arith.constant 0 : index
    %c10 = arith.constant 10 : index
    %217 = vector.load %arg6[%c0_45, %c10] : memref<8x16xf32, #tpu.memory_space<vmem>>, vector<8x2xf32>
    tpu.vector_store %arg6[%c0_45, %c10], %216 {strides = array<i32>} : memref<8x16xf32, #tpu.memory_space<vmem>>, vector<8x2xf32>,
    %218 = vector.extract_strided_slice %213 {offsets = [0, 0], sizes = [8, 512], strides = [1, 1]} : vector<8x640xf32> to vector<8x512xf32>
    %219 = vector.extract_strided_slice %216 {offsets = [0, 0], sizes = [8, 1], strides = [1, 1]} : vector<8x2xf32> to vector<8x1xf32>
    %220 = vector.broadcast %219 : vector<8x1xf32> to vector<8x512xf32>
    %221 = arith.mulf %220, %2 : vector<8x512xf32>
    %222 = vector.extract_strided_slice %216 {offsets = [0, 1], sizes = [8, 1], strides = [1, 1]} : vector<8x2xf32> to vector<8x1xf32>
    %223 = vector.broadcast %222 : vector<8x1xf32> to vector<8x512xf32>
    %224 = arith.mulf %223, %5 : vector<8x512xf32>
    %225 = arith.addf %221, %224 : vector<8x512xf32>
    %226 = arith.addf %225, %218 : vector<8x512xf32>
    %227 = arith.addf %226, %8 : vector<8x512xf32>
    %228 = vector.extract_strided_slice %227 {offsets = [0, 0], sizes = [8, 384], strides = [1, 1]} : vector<8x512xf32> to vector<8x384xf32>
    %229 = arith.negf %228 : vector<8x384xf32>
    %230 = math.exp %229 : vector<8x384xf32>
    %cst_46 = arith.constant 1.000000e+00 : f32
    %231 = vector.broadcast %cst_46 : f32 to vector<8x384xf32>
    %232 = arith.addf %231, %230 : vector<8x384xf32>
    %233 = arith.divf %231, %232 : vector<8x384xf32>
    %234 = vector.extract_strided_slice %227 {offsets = [0, 384], sizes = [8, 128], strides = [1, 1]} : vector<8x512xf32> to vector<8x128xf32>
    %235 = math.tanh %234 : vector<8x128xf32>
    %236 = vector.extract_strided_slice %233 {offsets = [0, 0], sizes = [8, 128], strides = [1, 1]} : vector<8x384xf32> to vector<8x128xf32>
    %237 = vector.extract_strided_slice %233 {offsets = [0, 128], sizes = [8, 128], strides = [1, 1]} : vector<8x384xf32> to vector<8x128xf32>
    %238 = vector.extract_strided_slice %233 {offsets = [0, 256], sizes = [8, 128], strides = [1, 1]} : vector<8x384xf32> to vector<8x128xf32>
    %239 = arith.mulf %237, %208 : vector<8x128xf32>
    %240 = arith.mulf %236, %235 : vector<8x128xf32>
    %241 = arith.addf %239, %240 : vector<8x128xf32>
    %242 = math.tanh %241 : vector<8x128xf32>
    %243 = arith.mulf %238, %242 : vector<8x128xf32>
    %244 = arith.truncf %243 : vector<8x128xf32> to vector<8x128xbf16>
    %c0_47 = arith.constant 0 : index
    %c0_48 = arith.constant 0 : index
    %245 = vector.load %arg3[%c0_47, %c0_48] : memref<128x640xbf16, #tpu.memory_space<vmem>>, vector<128x640xbf16>
    %cst_49 = arith.constant dense<0.000000e+00> : vector<8x640xf32>
    %246 = tpu.matmul %244, %245, %cst_49 {dimension_numbers = #tpu.dot_dimension_numbers<[1], [0], [0], [1], [0, 0, 1, 1], [], []>} : vector<8x128xbf16>, vector<128x640xbf16>, vector<8x640xf32> -> vector<8x640xf32>
    %247 = vector.extract_strided_slice %246 {offsets = [0, 512], sizes = [8, 2], strides = [1, 1]} : vector<8x640xf32> to vector<8x2xf32>
    %248 = arith.addf %216, %247 : vector<8x2xf32>
    %249 = arith.addf %248, %11 : vector<8x2xf32>
    %c0_50 = arith.constant 0 : index
    %c12 = arith.constant 12 : index
    %250 = vector.load %arg6[%c0_50, %c12] : memref<8x16xf32, #tpu.memory_space<vmem>>, vector<8x2xf32>
    tpu.vector_store %arg6[%c0_50, %c12], %249 {strides = array<i32>} : memref<8x16xf32, #tpu.memory_space<vmem>>, vector<8x2xf32>,
    %251 = vector.extract_strided_slice %246 {offsets = [0, 0], sizes = [8, 512], strides = [1, 1]} : vector<8x640xf32> to vector<8x512xf32>
    %252 = vector.extract_strided_slice %249 {offsets = [0, 0], sizes = [8, 1], strides = [1, 1]} : vector<8x2xf32> to vector<8x1xf32>
    %253 = vector.broadcast %252 : vector<8x1xf32> to vector<8x512xf32>
    %254 = arith.mulf %253, %2 : vector<8x512xf32>
    %255 = vector.extract_strided_slice %249 {offsets = [0, 1], sizes = [8, 1], strides = [1, 1]} : vector<8x2xf32> to vector<8x1xf32>
    %256 = vector.broadcast %255 : vector<8x1xf32> to vector<8x512xf32>
    %257 = arith.mulf %256, %5 : vector<8x512xf32>
    %258 = arith.addf %254, %257 : vector<8x512xf32>
    %259 = arith.addf %258, %251 : vector<8x512xf32>
    %260 = arith.addf %259, %8 : vector<8x512xf32>
    %261 = vector.extract_strided_slice %260 {offsets = [0, 0], sizes = [8, 384], strides = [1, 1]} : vector<8x512xf32> to vector<8x384xf32>
    %262 = arith.negf %261 : vector<8x384xf32>
    %263 = math.exp %262 : vector<8x384xf32>
    %cst_51 = arith.constant 1.000000e+00 : f32
    %264 = vector.broadcast %cst_51 : f32 to vector<8x384xf32>
    %265 = arith.addf %264, %263 : vector<8x384xf32>
    %266 = arith.divf %264, %265 : vector<8x384xf32>
    %267 = vector.extract_strided_slice %260 {offsets = [0, 384], sizes = [8, 128], strides = [1, 1]} : vector<8x512xf32> to vector<8x128xf32>
    %268 = math.tanh %267 : vector<8x128xf32>
    %269 = vector.extract_strided_slice %266 {offsets = [0, 0], sizes = [8, 128], strides = [1, 1]} : vector<8x384xf32> to vector<8x128xf32>
    %270 = vector.extract_strided_slice %266 {offsets = [0, 128], sizes = [8, 128], strides = [1, 1]} : vector<8x384xf32> to vector<8x128xf32>
    %271 = vector.extract_strided_slice %266 {offsets = [0, 256], sizes = [8, 128], strides = [1, 1]} : vector<8x384xf32> to vector<8x128xf32>
    %272 = arith.mulf %270, %241 : vector<8x128xf32>
    %273 = arith.mulf %269, %268 : vector<8x128xf32>
    %274 = arith.addf %272, %273 : vector<8x128xf32>
    %275 = math.tanh %274 : vector<8x128xf32>
    %276 = arith.mulf %271, %275 : vector<8x128xf32>
    %277 = arith.truncf %276 : vector<8x128xf32> to vector<8x128xbf16>
    %c0_52 = arith.constant 0 : index
    %c0_53 = arith.constant 0 : index
    %278 = vector.load %arg3[%c0_52, %c0_53] : memref<128x640xbf16, #tpu.memory_space<vmem>>, vector<128x640xbf16>
    %cst_54 = arith.constant dense<0.000000e+00> : vector<8x640xf32>
    %279 = tpu.matmul %277, %278, %cst_54 {dimension_numbers = #tpu.dot_dimension_numbers<[1], [0], [0], [1], [0, 0, 1, 1], [], []>} : vector<8x128xbf16>, vector<128x640xbf16>, vector<8x640xf32> -> vector<8x640xf32>
    %280 = vector.extract_strided_slice %279 {offsets = [0, 512], sizes = [8, 2], strides = [1, 1]} : vector<8x640xf32> to vector<8x2xf32>
    %281 = arith.addf %249, %280 : vector<8x2xf32>
    %282 = arith.addf %281, %11 : vector<8x2xf32>
    %c0_55 = arith.constant 0 : index
    %c14 = arith.constant 14 : index
    %283 = vector.load %arg6[%c0_55, %c14] : memref<8x16xf32, #tpu.memory_space<vmem>>, vector<8x2xf32>
    tpu.vector_store %arg6[%c0_55, %c14], %282 {strides = array<i32>} : memref<8x16xf32, #tpu.memory_space<vmem>>, vector<8x2xf32>,
    return
  }
}

</mosaic_0001>

<bundles_post_ra>
// kernel: tpu_custom_call.1
= control target key start
LH: loop header
LB: loop body
LE: loop exit
PB: predicated region body
PF: predicated region fallthrough
CT: control target
= control target key end

     0   :  { %11 = vsyncpa [#allocation3], 0  ;;  %s5333_s0 = inlined_call_operand.vmem [shape: f32[8,2], index: 0, kind: input, shape index: {}]   ;;  %s5334_s1 = inlined_call_operand.vmem [shape: f32[1,8,128], index: 1, kind: input, shape index: {}]   ;;  %s5335_s2 = inlined_call_operand.hbm [shape: f32[1,8,128], index: 2, kind: input, shape index: {}]   ;;  %s5336_s3 = inlined_call_operand.hbm [shape: bf16[128,640], index: 3, kind: input, shape index: {}]   ;;  %s5337_s4 = inlined_call_operand.vmem [shape: f32[2,512], index: 4, kind: input, shape index: {}]   ;;  %s5338_s5 = inlined_call_operand.hbm [shape: f32[1,640], index: 5, kind: input, shape index: {}]   ;;  %s5339_s6 = inlined_call_operand.hbm [shape: f32[8,16], index: 6, kind: output, shape index: {}]  }
   0x1   :  { %12 = vsyncpa [#allocation6], 0 }
   0x2   :  { %13 = vsyncpa [#allocation4], 0  ;;  %s4465_s21 = smov [#allocation5]  }
   0x3   :  { %s33_s22 = sshll.u32 %s4465_s21, 4  ;;  %s34_s22 = int_to_ptr.vmem [resolvable:$true] %s33_s22 }
   0x4   :  { %s4387_s23 = scalar_lea.vmem %s34_s22, 5120  ;;  %p4392_p1 = scmp.lt.s32.totalorder %s34_s22, %s34_s22 }
   0x5   :  { %p4388_p0 = scmp.ne.s32.totalorder %s34_s22, %s4387_s23  ;;  %p4393_p2 = scmp.lt.s32.totalorder %s4387_s23, %s4387_s23 }
   0x7   :  { %p4394_p3 = por %p4393_p2, %p4392_p1 }
   0x9   :  { %p4395_p4 = pnand %p4394_p3, %p4388_p0 }
   0xb   :  { %4398 = shalt.err (!%p4395_p4)
}
   0xc   :  { %s4466_s24 = smov 320   ;;  %s4467_s25 = smov 20  }
   0xd   :  { %39 = dma.hbm_to_vmem [thread:$0]  %s5336_s3, 5120, %s34_s22, [#allocation6], %s4466_s24, %s4466_s24, %s4467_s25  }
   0xe   :  { %s4468_s28 = smov [#allocation2]   ;;  %s4469_s30 = smov [#allocation7]  }
   0xf   :  { %s24_s29 = sshll.u32 %s4468_s28, 4  ;;  %s48_s7 = sshll.u32 %s4469_s30, 4  ;;  %s25_s29 = int_to_ptr.vmem [resolvable:$true] %s24_s29  ;;  %s49_s7 = int_to_ptr.vmem [resolvable:$true] %s48_s7 }
  0x10   :  { %s4407_s8 = scalar_lea.vmem %s25_s29, 128  ;;  %p4412_p6 = scmp.lt.s32.totalorder %s25_s29, %s25_s29 }
  0x11   :  { %p4408_p5 = scmp.ne.s32.totalorder %s25_s29, %s4407_s8  ;;  %p4413_p7 = scmp.lt.s32.totalorder %s4407_s8, %s4407_s8 }
  0x13   :  { %p4414_p8 = por %p4413_p7, %p4412_p6 }
  0x15   :  { %p4415_p9 = pnand %p4414_p8, %p4408_p5 }
  0x17   :  { %4418 = shalt.err (!%p4415_p9)
}
  0x18   :  { %27 = dma.hbm_to_vmem [thread:$0]  %s5335_s2, 128, %s25_s29, [#allocation3]  }
  0x19   :  { %s4427_s11 = scalar_lea.vmem %s49_s7, 80  ;;  %s4431_s3 = scalar_lea.vmem %s49_s7, 96 }
  0x1a   :  { %p4428_p10 = scmp.ne.s32.totalorder %s49_s7, %s4427_s11  ;;  %p4432_p11 = scmp.lt.s32.totalorder %s49_s7, %s49_s7 }
  0x1b   :  { %p4433_p12 = scmp.lt.s32.totalorder %s4431_s3, %s4427_s11 }
  0x1d   :  { %p4434_p13 = por %p4433_p12, %p4432_p11 }
  0x1f   :  { %p4435_p0 = pnand %p4434_p13, %p4428_p10 }
  0x21   :  { %4438 = shalt.err (!%p4435_p0)
}
  0x22   :  { %51 = dma.hbm_to_vmem [thread:$0]  %s5338_s5, 80, %s49_s7, [#allocation6]  }
  0x23   :  { %4459 = dma.done.wait [#allocation3], 128  }
  0x24   :  { %4460 = vsyncadd [#allocation3], 4294967168 }
  0x25   :  { %4461 = dma.done.wait [#allocation6], 5200  }
  0x26   :  { %4462 = vsyncadd [#allocation6], 4294962096  ;;  %v5341_v0 = vmov 0   ;;  %v4530_v1 = vld [vmem:[#allocation5 + $0x11c] ss:$20 sps:$4 sm:$0xff]   ;;  %v5340_v35 = vmov 1   ;;  %v64_v38 = vlaneseq }
  0x27   :  { %380 = vmatprep.mubr.bf16.mxu0 %v5341_v0  ;;  %421 = vmatprep.mubr.bf16.mxu1 %v5341_v0  ;;  %v4532_v2 = vld [vmem:[#allocation5 + $0x124] ss:$20 sps:$4 sm:$0xff]   ;;  %v4537_v4 = vld [vmem:[#allocation5 + $0x120] ss:$20 sps:$4 sm:$0xff]   ;;  %v4544_v6 = vld [vmem:[#allocation5 + $0xfc] ss:$20 sps:$4 sm:$0xff]  }
  0x28   :  { %4037 = vset.pattern.permute.xlu0 %v5341_v0  ;;  %4039 = vset.pattern.permute.xlu1 %v5341_v0  ;;  %v4535_v3 = vld [vmem:[#allocation5 + $0x118] ss:$20 sps:$4 sm:$0xff]   ;;  %v4540_v5 = vld [vmem:[#allocation5 + $0xf4] ss:$20 sps:$4 sm:$0xff]   ;;  %v4546_v7 = vld [vmem:[#allocation5 + $0xf0] ss:$20 sps:$4 sm:$0xff]  }
  0x29   :  { %348 = vmatprep.subr.bf16.mxu0 %v4530_v1  ;;  %389 = vmatprep.subr.bf16.mxu1 %v4532_v2  ;;  %v4549_v8 = vld [vmem:[#allocation5 + $0xf8] ss:$20 sps:$4 sm:$0xff]   ;;  %v4554_v10 = vld [vmem:[#allocation5 + $0xd4] ss:$20 sps:$4 sm:$0xff]   ;;  %v4558_v12 = vld [vmem:[#allocation5 + $0xd0] ss:$20 sps:$4 sm:$0xff]  }
  0x2a   :  { %349 = vmatpush1.bf16.msra.mxu0 %v4535_v3  ;;  %390 = vmatpush1.bf16.msra.mxu1 %v4537_v4  ;;  %v4552_v9 = vld [vmem:[#allocation5 + $0xcc] ss:$20 sps:$4 sm:$0xff]   ;;  %v4556_v11 = vld [vmem:[#allocation5 + $0xc8] ss:$20 sps:$4 sm:$0xff]   ;;  %v4562_v13 = vld [vmem:[#allocation5 + $0xa4] ss:$20 sps:$4 sm:$0xff]  }
  0x2b   :  { %350 = vmatprep.subr.bf16.mxu0 %v4540_v5  ;;  %391 = vmatprep.subr.bf16.mxu1 %v4544_v6  ;;  %v4566_v14 = vld [vmem:[#allocation5 + $0xac] ss:$20 sps:$4 sm:$0xff]   ;;  %v4572_v16 = vld [vmem:[#allocation5 + $0xa8] ss:$20 sps:$4 sm:$0xff]   ;;  %v4578_v18 = vld [vmem:[#allocation5 + $0x84] ss:$20 sps:$4 sm:$0xff]  }
  0x2c   :  { %v4568_v15 = vld [vmem:[#allocation5 + $0xa0] ss:$20 sps:$4 sm:$0xff]   ;;  %v4574_v17 = vld [vmem:[#allocation5 + $0x7c] ss:$20 sps:$4 sm:$0xff]   ;;  %v4580_v19 = vld [vmem:[#allocation5 + $0x78] ss:$20 sps:$4 sm:$0xff]  }
  0x2d   :  { %v4582_v20 = vld [vmem:[#allocation5 + $0x80] ss:$20 sps:$4 sm:$0xff]   ;;  %v4590_v22 = vld [vmem:[#allocation5 + $0x5c] ss:$20 sps:$4 sm:$0xff]   ;;  %v4596_v24 = vld [vmem:[#allocation5 + $0x58] ss:$20 sps:$4 sm:$0xff]  }
  0x2e   :  { %351 = vmatpush1.bf16.msra.mxu0 %v4546_v7  ;;  %392 = vmatpush1.bf16.msra.mxu1 %v4549_v8  ;;  %v4586_v21 = vld [vmem:[#allocation5 + $0x54] ss:$20 sps:$4 sm:$0xff]   ;;  %v4594_v23 = vld [vmem:[#allocation5 + $0x50] ss:$20 sps:$4 sm:$0xff]   ;;  %v4600_v25 = vld [vmem:[#allocation5 + $0x2c] ss:$20 sps:$4 sm:$0xff]  }
  0x2f   :  { %352 = vmatprep.subr.bf16.mxu0 %v4552_v9  ;;  %393 = vmatprep.subr.bf16.mxu1 %v4554_v10  ;;  %v4602_v26 = vld [vmem:[#allocation5 + $0x34] ss:$20 sps:$4 sm:$0xff]   ;;  %v4607_v27 = vld [vmem:[%s5333_s0] sm:$0xff]  ;;  %v4611_v29 = vld [vmem:[#allocation5 + $0x30] ss:$20 sps:$4 sm:$0xff]   ;;  %v5343_v37 = vmov 0.0  }
  0x30   :  { %v4609_v28 = vld [vmem:[#allocation5 + $0x28] ss:$20 sps:$4 sm:$0xff]   ;;  %432 = vperm.xlu0 %4037, %v4607_v27   ;;  %v4614_v30 = vld [vmem:[#allocation5 + $0x4] ss:$20 sps:$4 sm:$0xff]   ;;  %v4616_v31 = vld [vmem:[#allocation5 + $0xc] ss:$20 sps:$4 sm:$0xff]  }
  0x31   :  { %v4622_v32 = vld [vmem:[#allocation5] ss:$20 sps:$4 sm:$0xff]   ;;  %v4624_v33 = vld [vmem:[#allocation5 + $0x8] ss:$20 sps:$4 sm:$0xff]   ;;  %v65_v39 = vshrl.u32 %v64_v38, 7  ;;  %vm4473_vm0 = vmmov 0  }
  0x32   :  { %353 = vmatpush1.bf16.msra.mxu0 %v4556_v11  ;;  %394 = vmatpush1.bf16.msra.mxu1 %v4558_v12  ;;  %v138_v34 = vld [vmem:[%s5334_s1] sm:$0xff]  ;;  %v107_v52 = vld [vmem:[#allocation7] sm:$0xf]  ;;  %vm656_vm1 = vcmask 15360   ;;  %s4475_s18 = smov 2   ;;  %s4476_s19 = smov 8  }
  0x33   :  { %354 = vmatprep.subr.bf16.mxu0 %v4562_v13  ;;  %395 = vmatprep.subr.bf16.mxu1 %v4566_v14  ;;  %v139_v36 = vpack.c.bf16 %v138_v34, %v138_v34  ;;  %v66_v41 = vsub.s32 0, %v65_v39  ;;  %v62_v42 = vld [vmem:[%s5337_s4] ss:$2 sm:$0xf]  ;;  %v70_v44 = vsub.s32 1, %v65_v39  ;;  %v74_v53 = vsub.s32 2, %v65_v39 }
  0x34   :  { %4038 = vset.pattern.permute.xlu0 %v5340_v35  ;;  %v3474_v43 = vld [vmem:[%s5337_s4 + $0x1] ss:$2 sm:$0xf]  ;;  %s4474_s4 = smov 4   ;;  %s4477_s20 = smov 6   ;;  %vm1096_vm2 = vcmask 31760  }
  0x35   :  { %440 = vperm.xlu0 %4038, %v4607_v27   ;;  %v4679_v45 = vrot.slane %v62_v42, %v66_v41  ;;  %v4681_v46 = vrot.slane %v3474_v43, %v66_v41  ;;  %v4683_v48 = vrot.slane %v62_v42, %v70_v44  ;;  %v4685_v49 = vrot.slane %v3474_v43, %v70_v44  ;;  %s4478_s21 = smov 12   ;;  %s4479_s22 = smov 10  }
  0x36   :  { %355 = vmatpush1.bf16.msra.mxu0 %v4568_v15  ;;  %396 = vmatpush1.bf16.msra.mxu1 %v4572_v16  ;;  %v4691_v56 = vrot.slane %v107_v52, %v66_v41  ;;  %v4693_v59 = vrot.slane %v62_v42, %v74_v53  ;;  %v4695_v60 = vrot.slane %v3474_v43, %v74_v53  ;;  %vm1535_vm3 = vcmask 48160   ;;  %s4480_s23 = smov 14   ;;  %s4481_s24 = smov [#allocation8]  }
  0x37   :  { %356 = vmatprep.subr.bf16.mxu0 %v4574_v17  ;;  %397 = vmatprep.subr.bf16.mxu1 %v4578_v18  ;;  %5374 = vst [vmem:[#allocation12_spill] sm:$0xff] %v4679_v45  ;;  %5375 = vst [vmem:[#allocation13_spill] sm:$0xff] %v4681_v46  ;;  %v4697_v63 = vrot.slane %v107_v52, %v70_v44  ;;  %vm1974_vm4 = vcmask 64560   ;;  %vm2413_vm5 = vcmask 80960   ;;  %vm2852_vm6 = vcmask 97360   ;;  %s3464_s25 = sshll.u32 %s4481_s24, 4  ;;  %s3465_s25 = int_to_ptr.vmem [resolvable:$true] %s3464_s25 }
  0x38   :  { %5376 = vst [vmem:[#allocation14_spill] sm:$0xff] %v4683_v48  ;;  %5377 = vst [vmem:[#allocation15_spill] sm:$0xff] %v4685_v49  ;;  %vm3291_vm7 = vcmask 113760   ;;  %vm3456_vm8 = vcmask 130160   ;;  %s4439_s26 = scalar_lea.vmem %s3465_s25, 128  ;;  %p4444_p2 = scmp.lt.s32.totalorder %s3465_s25, %s3465_s25 }
  0x39   :  { %p4440_p1 = scmp.ne.s32.totalorder %s3465_s25, %s4439_s26  ;;  %p4445_p3 = scmp.lt.s32.totalorder %s4439_s26, %s4439_s26 }
  0x3a   :  { %357 = vmatpush1.bf16.msra.mxu0 %v4580_v19  ;;  %398 = vmatpush1.bf16.msra.mxu1 %v4582_v20 }
  0x3b   :  { %358 = vmatprep.subr.bf16.mxu0 %v4586_v21  ;;  %399 = vmatprep.subr.bf16.mxu1 %v4590_v22  ;;  %p4446_p4 = por %p4445_p3, %p4444_p2 }
  0x3d   :  { %p4447_p5 = pnand %p4446_p4, %p4440_p1 }
  0x3e   :  { %359 = vmatpush1.bf16.msra.mxu0 %v4594_v23  ;;  %400 = vmatpush1.bf16.msra.mxu1 %v4596_v24 }
  0x3f   :  { %360 = vmatprep.subr.bf16.mxu0 %v4600_v25  ;;  %401 = vmatprep.subr.bf16.mxu1 %v4602_v26 }
  0x42   :  { %361 = vmatpush1.bf16.msra.mxu0 %v4609_v28  ;;  %402 = vmatpush1.bf16.msra.mxu1 %v4611_v29 }
  0x43   :  { %362 = vmatprep.subr.bf16.mxu0 %v4614_v30  ;;  %403 = vmatprep.subr.bf16.mxu1 %v4616_v31 }
  0x46   :  { %363 = vmatpush1.bf16.msra.mxu0 %v4622_v32  ;;  %404 = vmatpush1.bf16.msra.mxu1 %v4624_v33 }
  0x47   :  { %532 = vmatprep.subr.bf16.mxu0 %v4530_v1  ;;  %573 = vmatprep.subr.bf16.mxu1 %v4532_v2 }
  0x49   :  { %381 = vmatmul.mubr.bf16.vlgmr.msra.gmra.mxu0 %v139_v36  ;;  %422 = vmatmul.mubr.bf16.vlgmr.msra.gmra.mxu1 %v139_v36  ;;  %v78_v36 = vsub.s32 3, %v65_v39 }
  0x4a   :  { %533 = vmatpush1.bf16.msra.mxu0 %v4535_v3  ;;  %574 = vmatpush1.bf16.msra.mxu1 %v4537_v4 }
  0x4b   :  { %534 = vmatprep.subr.bf16.mxu0 %v4540_v5  ;;  %575 = vmatprep.subr.bf16.mxu1 %v4544_v6  ;;  %v4705_v44 = vrot.slane %v3474_v43, %v78_v36 }
  0x4c   :  { %564 = vmatprep.mubr.bf16.mxu0 %v5341_v0  ;;  %605 = vmatprep.mubr.bf16.mxu1 %v5341_v0 }
  0x4e   :  { %535 = vmatpush1.bf16.msra.mxu0 %v4546_v7  ;;  %576 = vmatpush1.bf16.msra.mxu1 %v4549_v8 }
  0x4f   :  { %536 = vmatprep.subr.bf16.mxu0 %v4552_v9  ;;  %577 = vmatprep.subr.bf16.mxu1 %v4554_v10 }
  0x52   :  { %537 = vmatpush1.bf16.msra.mxu0 %v4556_v11  ;;  %578 = vmatpush1.bf16.msra.mxu1 %v4558_v12 }
  0x53   :  { %538 = vmatprep.subr.bf16.mxu0 %v4562_v13  ;;  %579 = vmatprep.subr.bf16.mxu1 %v4566_v14 }
  0x56   :  { %539 = vmatpush1.bf16.msra.mxu0 %v4568_v15  ;;  %580 = vmatpush1.bf16.msra.mxu1 %v4572_v16 }
  0x57   :  { %540 = vmatprep.subr.bf16.mxu0 %v4574_v17  ;;  %581 = vmatprep.subr.bf16.mxu1 %v4578_v18 }
  0x5a   :  { %541 = vmatpush1.bf16.msra.mxu0 %v4580_v19  ;;  %582 = vmatpush1.bf16.msra.mxu1 %v4582_v20 }
  0x5b   :  { %542 = vmatprep.subr.bf16.mxu0 %v4586_v21  ;;  %583 = vmatprep.subr.bf16.mxu1 %v4590_v22 }
  0x5e   :  { %543 = vmatpush1.bf16.msra.mxu0 %v4594_v23  ;;  %584 = vmatpush1.bf16.msra.mxu1 %v4596_v24 }
  0x5f   :  { %544 = vmatprep.subr.bf16.mxu0 %v4600_v25  ;;  %585 = vmatprep.subr.bf16.mxu1 %v4602_v26 }
  0x62   :  { %545 = vmatpush1.bf16.msra.mxu0 %v4609_v28  ;;  %586 = vmatpush1.bf16.msra.mxu1 %v4611_v29 }
  0x63   :  { %546 = vmatprep.subr.bf16.mxu0 %v4614_v30  ;;  %587 = vmatprep.subr.bf16.mxu1 %v4616_v31 }
  0x66   :  { %547 = vmatpush1.bf16.msra.mxu0 %v4622_v32  ;;  %588 = vmatpush1.bf16.msra.mxu1 %v4624_v33 }
  0x67   :  { %968 = vmatprep.subr.bf16.mxu1 %v4530_v1  ;;  %3860 = vmatprep.subr.bf16.mxu0 %v5343_v37 }
  0xab   :  { %v433_v40 = vpop.permute.xlu0 %432 }
  0xac   :  { %v435_v50 = vmul.f32 %v433_v40, %v4679_v45  ;;  %v436_v54 = vmul.f32 %v433_v40, %v4683_v48  ;;  %v437_v41 = vmul.f32 %v433_v40, %v4693_v59  ;;  %v4703_v48 = vrot.slane %v62_v42, %v78_v36 }
  0xad   :  { %v4712_v42 = vrot.slane %v107_v52, %v78_v36 }
  0xb0   :  { %v441_v47 = vpop.permute.xlu0 %440 }
  0xb1   :  { %v443_v51 = vmul.f32 %v441_v47, %v4681_v46  ;;  %v444_v55 = vmul.f32 %v441_v47, %v4685_v49 }
  0xb3   :  { %v447_v57 = vadd.f32 %v443_v51, %v435_v50  ;;  %v448_v1 = vadd.f32 %v444_v55, %v436_v54  ;;  %v445_v50 = vmul.f32 %v441_v47, %v4695_v60 }
 0x109   :  { %v382_v58 = vpop.f32.mrf.mxu0  ;;  %v423_v61 = vpop.f32.mrf.mxu1 }
 0x10a   :  { %v451_v62 = vadd.f32 %v447_v57, %v382_v58  ;;  %v449_v57 = vadd.f32 %v445_v50, %v437_v41  ;;  %v4707_v58 = vrot.slane %v107_v52, %v74_v53 }
 0x10b   :  { %v384_v34 = vpop.f32.mrf.mxu0  ;;  %v425_v38 = vpop.f32.mrf.mxu1 }
 0x10c   :  { %v455_v35 = vadd.f32 %v451_v62, %v4691_v56  ;;  %v452_v0 = vadd.f32 %v448_v1, %v384_v34  ;;  %v453_v62 = vadd.f32 %v449_v57, %v423_v61  ;;  %v438_v1 = vmul.f32 %v433_v40, %v4703_v48 }
 0x10d   :  { %v386_v51 = vpop.f32.mrf.mxu0  ;;  %v427_v37 = vpop.f32.mrf.mxu1 }
 0x10e   :  { %v3508_v49 = vmul.f32 -1.442695, %v455_v35  ;;  %v456_v46 = vadd.f32 %v452_v0, %v4697_v63  ;;  %v446_v37 = vmul.f32 %v441_v47, %v4705_v44  ;;  %v457_v35 = vadd.f32 %v453_v62, %v4707_v58  ;;  %v137_v47 = vld [vmem:[#allocation2] sm:$0xff] }
 0x10f   :  { %v387_v54 = vpop.f32.mrf.mxu0  ;;  %v428_v55 = vpop.f32.mrf.mxu1 }
 0x110   :  { %4250 = vpow2.f32 %v3508_v49  ;;  %v3509_v39 = vmul.f32 -1.442695, %v456_v46  ;;  %v450_v0 = vadd.f32 %v446_v37, %v438_v1  ;;  %v3510_v34 = vmul.f32 -1.442695, %v457_v35  ;;  %v4090_v1 = vld [vmem:[#allocation5 + $0x128] ss:$20 sps:$4 sm:$0xff]  }
 0x111   :  { %v4091_v35 = vld [vmem:[#allocation5 + $0x100] ss:$20 sps:$4 sm:$0xff]  }
 0x112   :  { %4252 = vpow2.f32 %v3509_v39  ;;  %v454_v43 = vadd.f32 %v450_v0, %v425_v38  ;;  %v5378_v0 = vmov 0.0  }
 0x113   :  { %4254 = vpow2.f32 %v3510_v34  ;;  %v4092_v34 = vld [vmem:[#allocation5 + $0xd8] ss:$20 sps:$4 sm:$0xff]  }
 0x114   :  { %v458_v49 = vadd.f32 %v454_v43, %v4712_v42  ;;  %v5379_v43 = vmov 0  }
 0x11d   :  { %v4251_v51 = vpop.eup %4250 }
 0x11e   :  { %v468_v46 = vadd.f32 1.0, %v4251_v51  ;;  %v4093_v51 = vld [vmem:[#allocation5 + $0xb0] ss:$20 sps:$4 sm:$0xff]  }
 0x11f   :  { %v4253_v41 = vpop.eup %4252 }
 0x120   :  { %4256 = vrcp.f32 %v468_v46  ;;  %v469_v53 = vadd.f32 1.0, %v4253_v41  ;;  %v4255_v40 = vpop.eup %4254 }
 0x121   :  { %4258 = vtanh.f32 %v458_v49  ;;  %v470_v55 = vadd.f32 1.0, %v4255_v40 }
 0x122   :  { %4260 = vrcp.f32 %v469_v53 }
 0x123   :  { %4262 = vrcp.f32 %v470_v55 }
 0x12d   :  { %v4257_v61 = vpop.eup %4256 }
 0x12e   :  { %v4259_v50 = vpop.eup %4258 }
 0x12f   :  { %v4261_v54 = vpop.eup %4260  ;;  %v479_v36 = vmul.f32 %v4259_v50, %v4257_v61 }
 0x130   :  { %v478_v52 = vmul.f32 %v4261_v54, %v137_v47  ;;  %v4263_v39 = vpop.eup %4262 }
 0x132   :  { %v4715_v38 = vadd.f32 %v479_v36, %v478_v52 }
 0x134   :  { %4264 = vtanh.f32 %v4715_v38 }
 0x141   :  { %v4265_v57 = vpop.eup %4264 }
 0x142   :  { %v482_v62 = vmul.f32 %v4265_v57, %v4263_v39 }
 0x144   :  { %v483_v37 = vpack.c.bf16 %v482_v62, %v482_v62 }
 0x146   :  { %565 = vmatmul.mubr.bf16.vlgmr.msra.gmra.mxu0 %v483_v37  ;;  %606 = vmatmul.mubr.bf16.vlgmr.msra.gmra.mxu1 %v483_v37 }
 0x147   :  { %3861 = vmatpush3.bf16.msra.mxu0 %v4090_v1  ;;  %3876 = vmatprep.mubr.msk.bf16.mxu0 %vm4473_vm0, %v5378_v0 }
 0x148   :  { %3862 = vmatprep.subr.bf16.mxu0 %v5378_v0  ;;  %969 = vmatpush1.bf16.msra.mxu1 %v4535_v3  ;;  %v4094_v3 = vld [vmem:[#allocation5 + $0x88] ss:$20 sps:$4 sm:$0xff]  }
 0x149   :  { %970 = vmatprep.subr.bf16.mxu1 %v4540_v5  ;;  %1000 = vmatprep.mubr.bf16.mxu1 %v5379_v43  ;;  %v4095_v5 = vld [vmem:[#allocation5 + $0x60] ss:$20 sps:$4 sm:$0xff]  }
 0x14b   :  { %3863 = vmatpush3.bf16.msra.mxu0 %v4091_v35 }
 0x14c   :  { %3864 = vmatprep.subr.bf16.mxu0 %v5378_v0  ;;  %971 = vmatpush1.bf16.msra.mxu1 %v4546_v7  ;;  %v4096_v7 = vld [vmem:[#allocation5 + $0x38] ss:$20 sps:$4 sm:$0xff]  }
 0x14d   :  { %972 = vmatprep.subr.bf16.mxu1 %v4552_v9  ;;  %v4097_v9 = vld [vmem:[#allocation5 + $0x10] ss:$20 sps:$4 sm:$0xff]  }
 0x14f   :  { %3865 = vmatpush3.bf16.msra.mxu0 %v4092_v34 }
 0x150   :  { %3866 = vmatprep.subr.bf16.mxu0 %v5378_v0  ;;  %973 = vmatpush1.bf16.msra.mxu1 %v4556_v11 }
 0x151   :  { %974 = vmatprep.subr.bf16.mxu1 %v4562_v13 }
 0x153   :  { %3867 = vmatpush3.bf16.msra.mxu0 %v4093_v51 }
 0x154   :  { %3868 = vmatprep.subr.bf16.mxu0 %v5378_v0  ;;  %975 = vmatpush1.bf16.msra.mxu1 %v4568_v15 }
 0x155   :  { %976 = vmatprep.subr.bf16.mxu1 %v4574_v17 }
 0x157   :  { %3869 = vmatpush3.bf16.msra.mxu0 %v4094_v3 }
 0x158   :  { %3870 = vmatprep.subr.bf16.mxu0 %v5378_v0  ;;  %977 = vmatpush1.bf16.msra.mxu1 %v4580_v19 }
 0x159   :  { %978 = vmatprep.subr.bf16.mxu1 %v4586_v21  ;;  %v5381_v21 = vmov 1  }
 0x15b   :  { %3871 = vmatpush3.bf16.msra.mxu0 %v4095_v5 }
 0x15c   :  { %3872 = vmatprep.subr.bf16.mxu0 %v5378_v0  ;;  %979 = vmatpush1.bf16.msra.mxu1 %v4594_v23 }
 0x15d   :  { %980 = vmatprep.subr.bf16.mxu1 %v4600_v25  ;;  %v5382_v25 = vld [vmem:[#allocation14_spill] sm:$0xff] }
 0x15f   :  { %3873 = vmatpush3.bf16.msra.mxu0 %v4096_v7 }
 0x160   :  { %3874 = vmatprep.subr.bf16.mxu0 %v5378_v0  ;;  %981 = vmatpush1.bf16.msra.mxu1 %v4609_v28 }
 0x161   :  { %982 = vmatprep.subr.bf16.mxu1 %v4614_v30 }
 0x163   :  { %3875 = vmatpush3.bf16.msra.mxu0 %v4097_v9 }
 0x164   :  { %1009 = vmatprep.subr.bf16.mxu0 %v4532_v2  ;;  %983 = vmatpush1.bf16.msra.mxu1 %v4622_v32 }
 0x165   :  { %3880 = vmatprep.subr.bf16.mxu1 %v5378_v0 }
 0x166   :  { %3877 = vmatmul.mubr.bf16.vlgmr.msra.gmra.mxu0 %v483_v37 }
 0x167   :  { %1010 = vmatpush1.bf16.msra.mxu0 %v4537_v4  ;;  %1041 = vmatprep.mubr.bf16.mxu0 %v5379_v43 }
 0x168   :  { %1011 = vmatprep.subr.bf16.mxu0 %v4544_v6 }
 0x16b   :  { %1012 = vmatpush1.bf16.msra.mxu0 %v4549_v8 }
 0x16c   :  { %1013 = vmatprep.subr.bf16.mxu0 %v4554_v10 }
 0x16f   :  { %1014 = vmatpush1.bf16.msra.mxu0 %v4558_v12 }
 0x170   :  { %1015 = vmatprep.subr.bf16.mxu0 %v4566_v14  ;;  %v4761_v14 = vld [vmem:[#allocation7 + $0x4] ss:$0 sm:$0xff] }
 0x171   :  { %5380 = vst [vmem:[#allocation16_spill] sm:$0xff] %v4761_v14 }
 0x173   :  { %1016 = vmatpush1.bf16.msra.mxu0 %v4572_v16 }
 0x174   :  { %1017 = vmatprep.subr.bf16.mxu0 %v4578_v18 }
 0x177   :  { %1018 = vmatpush1.bf16.msra.mxu0 %v4582_v20 }
 0x178   :  { %1019 = vmatprep.subr.bf16.mxu0 %v4590_v22 }
 0x17b   :  { %1020 = vmatpush1.bf16.msra.mxu0 %v4596_v24 }
 0x17c   :  { %1021 = vmatprep.subr.bf16.mxu0 %v4602_v26 }
 0x17f   :  { %1022 = vmatpush1.bf16.msra.mxu0 %v4611_v29  ;;  %v5384_v29 = vld [vmem:[#allocation15_spill] sm:$0xff] }
 0x180   :  { %1023 = vmatprep.subr.bf16.mxu0 %v4616_v31 }
 0x183   :  { %1024 = vmatpush1.bf16.msra.mxu0 %v4624_v33 }
 0x206   :  { %v566_v2 = vpop.f32.mrf.mxu0  ;;  %v607_v4 = vpop.f32.mrf.mxu1 }
 0x208   :  { %v568_v6 = vpop.f32.mrf.mxu0  ;;  %v609_v8 = vpop.f32.mrf.mxu1 }
 0x20a   :  { %v570_v10 = vpop.f32.mrf.mxu0  ;;  %v611_v11 = vpop.f32.mrf.mxu1 }
 0x20c   :  { %v571_v12 = vpop.f32.mrf.mxu0  ;;  %v612_v13 = vpop.f32.mrf.mxu1 }
 0x20d   :  { %v4098_v13 = vld [vmem:[#allocation5 + $0x128] ss:$20 sps:$4 sm:$0xff]  }
 0x226   :  { %v648_v15 = vpop.f32.mrf.mxu0 }
 0x227   :  { %v654_v16 = vadd.f32 %v648_v15, %v4607_v27  ;;  %v5383_v27 = vld [vmem:[#allocation13_spill] sm:$0xff] }
 0x228   :  { %v3878_v17 = vpop.f32.mrf.mxu0 }
 0x229   :  { %v4765_v18 = vadd.f32 %v4761_v14, %v654_v16  ;;  %v4099_v16 = vld [vmem:[#allocation5 + $0x100] ss:$20 sps:$4 sm:$0xff]   ;;  %v4101_v17 = vld [vmem:[#allocation5 + $0xb0] ss:$20 sps:$4 sm:$0xff]  }
 0x22a   :  { %v651_v19 = vpop.f32.mrf.mxu0 }
 0x22b   :  { %660 = vperm.xlu1 %4039, %v4765_v18   ;;  %657 = vst.msk [vmem:[#allocation8] sm:$0xff] %vm656_vm1, %v4765_v18  ;;  %v4102_v19 = vld [vmem:[#allocation5 + $0x88] ss:$20 sps:$4 sm:$0xff]  }
 0x22c   :  { %v3879_v20 = vpop.f32.mrf.mxu0 }
 0x22d   :  { %v4103_v20 = vld [vmem:[#allocation5 + $0x60] ss:$20 sps:$4 sm:$0xff]  }
 0x22f   :  { %4040 = vset.pattern.permute.xlu1 %v5381_v21  ;;  %v4104_v21 = vld [vmem:[#allocation5 + $0x38] ss:$20 sps:$4 sm:$0xff]  }
 0x230   :  { %668 = vperm.xlu1 %4040, %v4765_v18  }
 0x234   :  { %4041 = vset.pattern.permute.xlu1 %v5379_v43 }
 0x2a6   :  { %v661_v22 = vpop.permute.xlu1 %660 }
 0x2a7   :  { %v663_v24 = vmul.f32 %v661_v22, %v4679_v45  ;;  %v664_v26 = vmul.f32 %v661_v22, %v5382_v25  ;;  %v665_v41 = vmul.f32 %v661_v22, %v4693_v59  ;;  %v666_v55 = vmul.f32 %v661_v22, %v4703_v48  ;;  %v4105_v22 = vld [vmem:[#allocation5 + $0x10] ss:$20 sps:$4 sm:$0xff]  }
 0x2ab   :  { %v669_v23 = vpop.permute.xlu1 %668 }
 0x2ac   :  { %v671_v28 = vmul.f32 %v669_v23, %v5383_v27  ;;  %v672_v30 = vmul.f32 %v669_v23, %v5384_v29  ;;  %v673_v33 = vmul.f32 %v669_v23, %v4695_v60  ;;  %v674_v54 = vmul.f32 %v669_v23, %v4705_v44 }
 0x2ae   :  { %v675_v31 = vadd.f32 %v671_v28, %v663_v24  ;;  %v676_v32 = vadd.f32 %v672_v30, %v664_v26  ;;  %v677_v61 = vadd.f32 %v673_v33, %v665_v41  ;;  %v678_v36 = vadd.f32 %v674_v54, %v666_v55  ;;  %v4817_v54 = vld [vmem:[#allocation5 + $0x120] ss:$20 sps:$4 sm:$0xff]   ;;  %v4819_v55 = vld [vmem:[#allocation5 + $0x124] ss:$20 sps:$4 sm:$0xff]  }
 0x2b0   :  { %v679_v49 = vadd.f32 %v675_v31, %v566_v2  ;;  %v680_v46 = vadd.f32 %v676_v32, %v568_v6  ;;  %v681_v52 = vadd.f32 %v677_v61, %v607_v4  ;;  %v682_v57 = vadd.f32 %v678_v36, %v609_v8  ;;  %v4828_v36 = vld [vmem:[#allocation5 + $0xf0] ss:$20 sps:$4 sm:$0xff]  }
 0x2b2   :  { %v683_v53 = vadd.f32 %v679_v49, %v4691_v56  ;;  %v684_v40 = vadd.f32 %v680_v46, %v4697_v63  ;;  %v685_v39 = vadd.f32 %v681_v52, %v4707_v58  ;;  %v686_v1 = vadd.f32 %v682_v57, %v4712_v42  ;;  %v4821_v52 = vld [vmem:[#allocation5 + $0xf4] ss:$20 sps:$4 sm:$0xff]   ;;  %v4834_v57 = vld [vmem:[#allocation5 + $0xcc] ss:$20 sps:$4 sm:$0xff]  }
 0x2b4   :  { %v3519_v47 = vmul.f32 -1.442695, %v683_v53  ;;  %v3520_v50 = vmul.f32 -1.442695, %v684_v40  ;;  %v3521_v62 = vmul.f32 -1.442695, %v685_v39 }
 0x2b5   :  { %v4832_v39 = vld [vmem:[#allocation5 + $0xf8] ss:$20 sps:$4 sm:$0xff]  }
 0x2b6   :  { %4266 = vpow2.f32 %v3519_v47  ;;  %v4813_v47 = vld [vmem:[#allocation5 + $0x118] ss:$20 sps:$4 sm:$0xff]  }
 0x2b7   :  { %4268 = vpow2.f32 %v3520_v50  ;;  %v4815_v50 = vld [vmem:[#allocation5 + $0x11c] ss:$20 sps:$4 sm:$0xff]  }
 0x2b8   :  { %4270 = vpow2.f32 %v3521_v62  ;;  %5386 = vst [vmem:[#allocation17_spill] sm:$0xff] %v4815_v50  ;;  %1407 = vmatprep.subr.bf16.mxu0 %v4815_v50  ;;  %v4837_v62 = vld [vmem:[#allocation5 + $0xd4] ss:$20 sps:$4 sm:$0xff]  }
 0x2b9   :  { %4272 = vtanh.f32 %v686_v1  ;;  %v4840_v1 = vld [vmem:[#allocation5 + $0xc8] ss:$20 sps:$4 sm:$0xff]  }
 0x2c3   :  { %v4267_v37 = vpop.eup %4266 }
 0x2c4   :  { %v4269_v35 = vpop.eup %4268  ;;  %v696_v34 = vadd.f32 1.0, %v4267_v37  ;;  %v4844_v37 = vld [vmem:[#allocation5 + $0xd0] ss:$20 sps:$4 sm:$0xff]  }
 0x2c5   :  { %v697_v51 = vadd.f32 1.0, %v4269_v35  ;;  %v4271_v3 = vpop.eup %4270  ;;  %v4846_v35 = vld [vmem:[#allocation5 + $0xa4] ss:$20 sps:$4 sm:$0xff]  }
 0x2c6   :  { %4274 = vrcp.f32 %v696_v34  ;;  %v4273_v5 = vpop.eup %4272  ;;  %v698_v2 = vadd.f32 1.0, %v4271_v3  ;;  %v4849_v34 = vld [vmem:[#allocation5 + $0xac] ss:$20 sps:$4 sm:$0xff]   ;;  %v4856_v3 = vld [vmem:[#allocation5 + $0xa8] ss:$20 sps:$4 sm:$0xff]  }
 0x2c7   :  { %4276 = vrcp.f32 %v697_v51  ;;  %v4852_v51 = vld [vmem:[#allocation5 + $0xa0] ss:$20 sps:$4 sm:$0xff]  }
 0x2c8   :  { %4278 = vrcp.f32 %v698_v2  ;;  %v4868_v2 = vld [vmem:[#allocation5 + $0x80] ss:$20 sps:$4 sm:$0xff]  }
 0x2d3   :  { %v4275_v7 = vpop.eup %4274 }
 0x2d4   :  { %v4277_v9 = vpop.eup %4276  ;;  %v707_v4 = vmul.f32 %v4275_v7, %v4273_v5  ;;  %v4858_v5 = vld [vmem:[#allocation5 + $0x7c] ss:$20 sps:$4 sm:$0xff]   ;;  %v4861_v7 = vld [vmem:[#allocation5 + $0x84] ss:$20 sps:$4 sm:$0xff]  }
 0x2d5   :  { %v706_v6 = vmul.f32 %v4277_v9, %v4715_v38  ;;  %v4279_v10 = vpop.eup %4278  ;;  %v4100_v38 = vld [vmem:[#allocation5 + $0xd8] ss:$20 sps:$4 sm:$0xff]  }
 0x2d6   :  { %v4864_v9 = vld [vmem:[#allocation5 + $0x78] ss:$20 sps:$4 sm:$0xff]  }
 0x2d7   :  { %v4785_v8 = vadd.f32 %v707_v4, %v706_v6  ;;  %v4870_v4 = vld [vmem:[#allocation5 + $0x54] ss:$20 sps:$4 sm:$0xff]   ;;  %v4873_v6 = vld [vmem:[#allocation5 + $0x5c] ss:$20 sps:$4 sm:$0xff]  }
 0x2d9   :  { %4280 = vtanh.f32 %v4785_v8 }
 0x2e6   :  { %v4281_v11 = vpop.eup %4280 }
 0x2e7   :  { %v710_v12 = vmul.f32 %v4281_v11, %v4279_v10  ;;  %v4876_v10 = vld [vmem:[#allocation5 + $0x50] ss:$20 sps:$4 sm:$0xff]   ;;  %v4880_v11 = vld [vmem:[#allocation5 + $0x58] ss:$20 sps:$4 sm:$0xff]  }
 0x2e9   :  { %v711_v15 = vpack.c.bf16 %v710_v12, %v710_v12  ;;  %v4882_v12 = vld [vmem:[#allocation5 + $0x2c] ss:$20 sps:$4 sm:$0xff]  }
 0x2eb   :  { %1001 = vmatmul.mubr.bf16.vlgmr.msra.gmra.mxu1 %v711_v15  ;;  %1042 = vmatmul.mubr.bf16.vlgmr.msra.gmra.mxu0 %v711_v15 }
 0x2ec   :  { %3881 = vmatpush3.bf16.msra.mxu1 %v4098_v13  ;;  %3896 = vmatprep.mubr.msk.bf16.mxu1 %vm4473_vm0, %v5378_v0  ;;  %v4885_v13 = vld [vmem:[#allocation5 + $0x34] ss:$20 sps:$4 sm:$0xff]  }
 0x2ed   :  { %3882 = vmatprep.subr.bf16.mxu1 %v5378_v0  ;;  %1439 = vmatprep.mubr.bf16.mxu0 %v5379_v43 }
 0x2ee   :  { %1408 = vmatpush1.bf16.msra.mxu0 %v4813_v47 }
 0x2ef   :  { %1409 = vmatprep.subr.bf16.mxu0 %v4821_v52 }
 0x2f0   :  { %3883 = vmatpush3.bf16.msra.mxu1 %v4099_v16  ;;  %v4892_v16 = vld [vmem:[#allocation5 + $0x30] ss:$20 sps:$4 sm:$0xff]  }
 0x2f1   :  { %3884 = vmatprep.subr.bf16.mxu1 %v5378_v0 }
 0x2f2   :  { %1410 = vmatpush1.bf16.msra.mxu0 %v4828_v36 }
 0x2f3   :  { %1411 = vmatprep.subr.bf16.mxu0 %v4834_v57 }
 0x2f4   :  { %3885 = vmatpush3.bf16.msra.mxu1 %v4100_v38  ;;  %v4894_v38 = vld [vmem:[#allocation5 + $0x4] ss:$20 sps:$4 sm:$0xff]  }
 0x2f5   :  { %3886 = vmatprep.subr.bf16.mxu1 %v5378_v0 }
 0x2f6   :  { %1412 = vmatpush1.bf16.msra.mxu0 %v4840_v1 }
 0x2f7   :  { %1413 = vmatprep.subr.bf16.mxu0 %v4846_v35 }
 0x2f8   :  { %3887 = vmatpush3.bf16.msra.mxu1 %v4101_v17  ;;  %v4897_v17 = vld [vmem:[#allocation5 + $0xc] ss:$20 sps:$4 sm:$0xff]  }
 0x2f9   :  { %3888 = vmatprep.subr.bf16.mxu1 %v5378_v0  ;;  %5387 = vst [vmem:[#allocation18_spill] sm:$0xff] %v4897_v17 }
 0x2fa   :  { %1414 = vmatpush1.bf16.msra.mxu0 %v4852_v51 }
 0x2fb   :  { %1415 = vmatprep.subr.bf16.mxu0 %v4858_v5 }
 0x2fc   :  { %3889 = vmatpush3.bf16.msra.mxu1 %v4102_v19  ;;  %v4900_v19 = vld [vmem:[#allocation5] ss:$20 sps:$4 sm:$0xff]  }
 0x2fd   :  { %3890 = vmatprep.subr.bf16.mxu1 %v5378_v0 }
 0x2fe   :  { %1416 = vmatpush1.bf16.msra.mxu0 %v4864_v9 }
 0x2ff   :  { %1417 = vmatprep.subr.bf16.mxu0 %v4870_v4 }
 0x300   :  { %3891 = vmatpush3.bf16.msra.mxu1 %v4103_v20  ;;  %v4904_v20 = vld [vmem:[#allocation5 + $0x8] ss:$20 sps:$4 sm:$0xff]  }
 0x301   :  { %3892 = vmatprep.subr.bf16.mxu1 %v5378_v0  ;;  %5388 = vst [vmem:[#allocation19_spill] sm:$0xff] %v4904_v20 }
 0x302   :  { %1418 = vmatpush1.bf16.msra.mxu0 %v4876_v10 }
 0x303   :  { %1419 = vmatprep.subr.bf16.mxu0 %v4882_v12 }
 0x304   :  { %3893 = vmatpush3.bf16.msra.mxu1 %v4104_v21 }
 0x305   :  { %3894 = vmatprep.subr.bf16.mxu1 %v5378_v0 }
 0x308   :  { %3895 = vmatpush3.bf16.msra.mxu1 %v4105_v22 }
 0x309   :  { %1448 = vmatprep.subr.bf16.mxu1 %v4819_v55 }
 0x30b   :  { %3897 = vmatmul.mubr.bf16.vlgmr.msra.gmra.mxu1 %v711_v15  ;;  %v4888_v15 = vld [vmem:[#allocation5 + $0x28] ss:$20 sps:$4 sm:$0xff]  }
 0x30c   :  { %1480 = vmatprep.mubr.bf16.mxu1 %v5379_v43  ;;  %1449 = vmatpush1.bf16.msra.mxu1 %v4817_v54 }
 0x30d   :  { %1420 = vmatpush1.bf16.msra.mxu0 %v4888_v15 }
 0x30e   :  { %1421 = vmatprep.subr.bf16.mxu0 %v4894_v38 }
 0x311   :  { %1422 = vmatpush1.bf16.msra.mxu0 %v4900_v19 }
 0x312   :  { %3900 = vmatprep.subr.bf16.mxu0 %v5378_v0 }
 0x3ab   :  { %v4799_v23 = vpop.f32.mrf.mxu1  ;;  %v4801_v24 = vpop.f32.mrf.mxu0 }
 0x3ad   :  { %v4803_v26 = vpop.f32.mrf.mxu1  ;;  %v4805_v28 = vpop.f32.mrf.mxu0 }
 0x3af   :  { %v1006_v30 = vpop.f32.mrf.mxu1  ;;  %v1047_v31 = vpop.f32.mrf.mxu0 }
 0x3b1   :  { %v1007_v32 = vpop.f32.mrf.mxu1  ;;  %v1048_v33 = vpop.f32.mrf.mxu0 }
 0x3cb   :  { %v1084_v49 = vpop.f32.mrf.mxu1 }
 0x3cc   :  { %v1090_v46 = vadd.f32 %v1084_v49, %v4765_v18  ;;  %v4824_v18 = vld [vmem:[#allocation5 + $0xfc] ss:$20 sps:$4 sm:$0xff]  }
 0x3cd   :  { %v3898_v41 = vpop.f32.mrf.mxu1  ;;  %1450 = vmatprep.subr.bf16.mxu1 %v4824_v18 }
 0x3ce   :  { %v4809_v53 = vadd.f32 %v4761_v14, %v1090_v46  ;;  %1451 = vmatpush1.bf16.msra.mxu1 %v4832_v39 }
 0x3cf   :  { %v1087_v40 = vpop.f32.mrf.mxu1  ;;  %1452 = vmatprep.subr.bf16.mxu1 %v4837_v62 }
 0x3d0   :  { %5385 = vst [vmem:[#allocation14_spill] sm:$0xff] %v4809_v53  ;;  %1107 = vperm.xlu0 %4038, %v4809_v53   ;;  %1099 = vperm.xlu1 %4041, %v4809_v53  }
 0x3d1   :  { %v3899_v61 = vpop.f32.mrf.mxu1 }
 0x3d2   :  { %1453 = vmatpush1.bf16.msra.mxu1 %v4844_v37 }
 0x3d3   :  { %1454 = vmatprep.subr.bf16.mxu1 %v4849_v34 }
 0x3d6   :  { %1455 = vmatpush1.bf16.msra.mxu1 %v4856_v3 }
 0x3d7   :  { %1456 = vmatprep.subr.bf16.mxu1 %v4861_v7 }
 0x3da   :  { %1457 = vmatpush1.bf16.msra.mxu1 %v4868_v2 }
 0x3db   :  { %1458 = vmatprep.subr.bf16.mxu1 %v4873_v6 }
 0x3de   :  { %1459 = vmatpush1.bf16.msra.mxu1 %v4880_v11 }
 0x3df   :  { %1460 = vmatprep.subr.bf16.mxu1 %v4885_v13 }
 0x3e2   :  { %1461 = vmatpush1.bf16.msra.mxu1 %v4892_v16 }
 0x3e3   :  { %1462 = vmatprep.subr.bf16.mxu1 %v4897_v17 }
 0x3e6   :  { %1463 = vmatpush1.bf16.msra.mxu1 %v4904_v20 }
 0x3e7   :  { %1846 = vmatprep.subr.bf16.mxu1 %v4815_v50 }
 0x44b   :  { %v1108_v21 = vpop.permute.xlu0 %1107  ;;  %v1100_v22 = vpop.permute.xlu1 %1099 }
 0x44c   :  { %v1110_v30 = vmul.f32 %v1108_v21, %v5383_v27  ;;  %v1111_v31 = vmul.f32 %v1108_v21, %v5384_v29  ;;  %v1102_v32 = vmul.f32 %v1100_v22, %v4679_v45  ;;  %v1103_v33 = vmul.f32 %v1100_v22, %v5382_v25 }
 0x44d   :  { %v1112_v41 = vmul.f32 %v1108_v21, %v4695_v60  ;;  %v1104_v40 = vmul.f32 %v1100_v22, %v4693_v59  ;;  %v1113_v45 = vmul.f32 %v1108_v21, %v4705_v44 }
 0x44e   :  { %v1114_v49 = vadd.f32 %v1110_v30, %v1102_v32  ;;  %v1115_v46 = vadd.f32 %v1111_v31, %v1103_v33  ;;  %v1105_v30 = vmul.f32 %v1100_v22, %v4703_v48 }
 0x44f   :  { %v1116_v50 = vadd.f32 %v1112_v41, %v1104_v40 }
 0x450   :  { %v1118_v61 = vadd.f32 %v1114_v49, %v4799_v23  ;;  %v1119_v14 = vadd.f32 %v1115_v46, %v4803_v26  ;;  %v1117_v32 = vadd.f32 %v1113_v45, %v1105_v30  ;;  %v4154_v30 = vld [vmem:[#allocation5 + $0x128] ss:$20 sps:$4 sm:$0xff]  }
 0x451   :  { %v1120_v31 = vadd.f32 %v1116_v50, %v4801_v24 }
 0x452   :  { %v1122_v53 = vadd.f32 %v1118_v61, %v4691_v56  ;;  %v1123_v27 = vadd.f32 %v1119_v14, %v4697_v63  ;;  %v1121_v26 = vadd.f32 %v1117_v32, %v4805_v28  ;;  %v4155_v32 = vld [vmem:[#allocation5 + $0x100] ss:$20 sps:$4 sm:$0xff]  }
 0x453   :  { %v1124_v23 = vadd.f32 %v1120_v31, %v4707_v58 }
 0x454   :  { %v3562_v29 = vmul.f32 -1.442695, %v1122_v53  ;;  %v3563_v20 = vmul.f32 -1.442695, %v1123_v27  ;;  %v1125_v49 = vadd.f32 %v1121_v26, %v4712_v42  ;;  %v4158_v26 = vld [vmem:[#allocation5 + $0x88] ss:$20 sps:$4 sm:$0xff]  }
 0x455   :  { %v3564_v33 = vmul.f32 -1.442695, %v1124_v23  ;;  %v4157_v23 = vld [vmem:[#allocation5 + $0xb0] ss:$20 sps:$4 sm:$0xff]  }
 0x456   :  { %4282 = vpow2.f32 %v3562_v29 }
 0x457   :  { %4284 = vpow2.f32 %v3563_v20 }
 0x458   :  { %4286 = vpow2.f32 %v3564_v33  ;;  %v4159_v33 = vld [vmem:[#allocation5 + $0x60] ss:$20 sps:$4 sm:$0xff]  }
 0x459   :  { %4288 = vtanh.f32 %v1125_v49  ;;  %v4160_v49 = vld [vmem:[#allocation5 + $0x38] ss:$20 sps:$4 sm:$0xff]  }
 0x463   :  { %v4283_v14 = vpop.eup %4282 }
 0x464   :  { %v4285_v46 = vpop.eup %4284  ;;  %v1135_v27 = vadd.f32 1.0, %v4283_v14  ;;  %v4161_v14 = vld [vmem:[#allocation5 + $0x10] ss:$20 sps:$4 sm:$0xff]  }
 0x465   :  { %v1136_v53 = vadd.f32 1.0, %v4285_v46  ;;  %v4287_v29 = vpop.eup %4286  ;;  %v5389_v46 = vld [vmem:[#allocation19_spill] sm:$0xff] }
 0x466   :  { %4290 = vrcp.f32 %v1135_v27  ;;  %v4289_v20 = vpop.eup %4288  ;;  %v1137_v45 = vadd.f32 1.0, %v4287_v29  ;;  %v5390_v27 = vld [vmem:[#allocation17_spill] sm:$0xff] }
 0x467   :  { %4292 = vrcp.f32 %v1136_v53 }
 0x468   :  { %4294 = vrcp.f32 %v1137_v45 }
 0x473   :  { %v4291_v21 = vpop.eup %4290 }
 0x474   :  { %v4293_v24 = vpop.eup %4292  ;;  %v1146_v50 = vmul.f32 %v4291_v21, %v4289_v20 }
 0x475   :  { %v1145_v22 = vmul.f32 %v4293_v24, %v4785_v8  ;;  %v4295_v41 = vpop.eup %4294  ;;  %v4156_v8 = vld [vmem:[#allocation5 + $0xd8] ss:$20 sps:$4 sm:$0xff]  }
 0x477   :  { %v4928_v28 = vadd.f32 %v1146_v50, %v1145_v22 }
 0x479   :  { %4296 = vtanh.f32 %v4928_v28 }
 0x486   :  { %v4297_v40 = vpop.eup %4296 }
 0x487   :  { %v1149_v61 = vmul.f32 %v4297_v40, %v4295_v41  ;;  %v5391_v40 = vld [vmem:[#allocation14_spill] sm:$0xff] }
 0x489   :  { %v1150_v31 = vpack.c.bf16 %v1149_v61, %v1149_v61 }
 0x48b   :  { %1440 = vmatmul.mubr.bf16.vlgmr.msra.gmra.mxu0 %v1150_v31  ;;  %1481 = vmatmul.mubr.bf16.vlgmr.msra.gmra.mxu1 %v1150_v31 }
 0x48c   :  { %3901 = vmatpush3.bf16.msra.mxu0 %v4154_v30  ;;  %3916 = vmatprep.mubr.msk.bf16.mxu0 %vm4473_vm0, %v5378_v0 }
 0x48d   :  { %3902 = vmatprep.subr.bf16.mxu0 %v5378_v0  ;;  %1847 = vmatpush1.bf16.msra.mxu1 %v4813_v47 }
 0x48e   :  { %1848 = vmatprep.subr.bf16.mxu1 %v4821_v52  ;;  %1878 = vmatprep.mubr.bf16.mxu1 %v5379_v43 }
 0x490   :  { %3903 = vmatpush3.bf16.msra.mxu0 %v4155_v32 }
 0x491   :  { %3904 = vmatprep.subr.bf16.mxu0 %v5378_v0  ;;  %1849 = vmatpush1.bf16.msra.mxu1 %v4828_v36 }
 0x492   :  { %1850 = vmatprep.subr.bf16.mxu1 %v4834_v57 }
 0x494   :  { %3905 = vmatpush3.bf16.msra.mxu0 %v4156_v8 }
 0x495   :  { %3906 = vmatprep.subr.bf16.mxu0 %v5378_v0  ;;  %1851 = vmatpush1.bf16.msra.mxu1 %v4840_v1 }
 0x496   :  { %1852 = vmatprep.subr.bf16.mxu1 %v4846_v35 }
 0x498   :  { %3907 = vmatpush3.bf16.msra.mxu0 %v4157_v23 }
 0x499   :  { %3908 = vmatprep.subr.bf16.mxu0 %v5378_v0  ;;  %1853 = vmatpush1.bf16.msra.mxu1 %v4852_v51 }
 0x49a   :  { %1854 = vmatprep.subr.bf16.mxu1 %v4858_v5 }
 0x49c   :  { %3909 = vmatpush3.bf16.msra.mxu0 %v4158_v26 }
 0x49d   :  { %3910 = vmatprep.subr.bf16.mxu0 %v5378_v0  ;;  %1855 = vmatpush1.bf16.msra.mxu1 %v4864_v9 }
 0x49e   :  { %1856 = vmatprep.subr.bf16.mxu1 %v4870_v4 }
 0x4a0   :  { %3911 = vmatpush3.bf16.msra.mxu0 %v4159_v33 }
 0x4a1   :  { %3912 = vmatprep.subr.bf16.mxu0 %v5378_v0  ;;  %1857 = vmatpush1.bf16.msra.mxu1 %v4876_v10 }
 0x4a2   :  { %1858 = vmatprep.subr.bf16.mxu1 %v4882_v12 }
 0x4a4   :  { %3913 = vmatpush3.bf16.msra.mxu0 %v4160_v49  ;;  %v5394_v49 = vld [vmem:[#allocation13_spill] sm:$0xff] }
 0x4a5   :  { %3914 = vmatprep.subr.bf16.mxu0 %v5378_v0  ;;  %1859 = vmatpush1.bf16.msra.mxu1 %v4888_v15 }
 0x4a6   :  { %1860 = vmatprep.subr.bf16.mxu1 %v4894_v38 }
 0x4a8   :  { %3915 = vmatpush3.bf16.msra.mxu0 %v4161_v14 }
 0x4a9   :  { %1887 = vmatprep.subr.bf16.mxu0 %v4819_v55  ;;  %1861 = vmatpush1.bf16.msra.mxu1 %v4900_v19 }
 0x4aa   :  { %3920 = vmatprep.subr.bf16.mxu1 %v5378_v0 }
 0x4ab   :  { %3917 = vmatmul.mubr.bf16.vlgmr.msra.gmra.mxu0 %v1150_v31  ;;  %v5392_v31 = vld [vmem:[#allocation16_spill] sm:$0xff] }
 0x4ac   :  { %1888 = vmatpush1.bf16.msra.mxu0 %v4817_v54  ;;  %1919 = vmatprep.mubr.bf16.mxu0 %v5379_v43 }
 0x4ad   :  { %1889 = vmatprep.subr.bf16.mxu0 %v4824_v18 }
 0x4b0   :  { %1890 = vmatpush1.bf16.msra.mxu0 %v4832_v39 }
 0x4b1   :  { %1891 = vmatprep.subr.bf16.mxu0 %v4837_v62 }
 0x4b4   :  { %1892 = vmatpush1.bf16.msra.mxu0 %v4844_v37 }
 0x4b5   :  { %1893 = vmatprep.subr.bf16.mxu0 %v4849_v34 }
 0x4b8   :  { %1894 = vmatpush1.bf16.msra.mxu0 %v4856_v3 }
 0x4b9   :  { %1895 = vmatprep.subr.bf16.mxu0 %v4861_v7 }
 0x4bc   :  { %1896 = vmatpush1.bf16.msra.mxu0 %v4868_v2 }
 0x4bd   :  { %1897 = vmatprep.subr.bf16.mxu0 %v4873_v6 }
 0x4c0   :  { %1898 = vmatpush1.bf16.msra.mxu0 %v4880_v11 }
 0x4c1   :  { %1899 = vmatprep.subr.bf16.mxu0 %v4885_v13 }
 0x4c4   :  { %1900 = vmatpush1.bf16.msra.mxu0 %v4892_v16 }
 0x4c5   :  { %1901 = vmatprep.subr.bf16.mxu0 %v4897_v17 }
 0x4c8   :  { %1902 = vmatpush1.bf16.msra.mxu0 %v5389_v46 }
 0x4c9   :  { %2285 = vmatprep.subr.bf16.mxu0 %v5390_v27  ;;  %v5395_v27 = vld [vmem:[#allocation15_spill] sm:$0xff] }
 0x54b   :  { %v1441_v53 = vpop.f32.mrf.mxu0  ;;  %v1482_v29 = vpop.f32.mrf.mxu1 }
 0x54d   :  { %v1443_v20 = vpop.f32.mrf.mxu0  ;;  %v1484_v21 = vpop.f32.mrf.mxu1 }
 0x54f   :  { %v1445_v24 = vpop.f32.mrf.mxu0  ;;  %v1486_v45 = vpop.f32.mrf.mxu1 }
 0x550   :  { %v5396_v45 = vld [vmem:[#allocation12_spill] sm:$0xff] }
 0x551   :  { %v1446_v50 = vpop.f32.mrf.mxu0  ;;  %v1487_v22 = vpop.f32.mrf.mxu1 }
 0x56b   :  { %v1523_v41 = vpop.f32.mrf.mxu0 }
 0x56c   :  { %v1529_v61 = vadd.f32 %v1523_v41, %v5391_v40 }
 0x56d   :  { %v3918_v30 = vpop.f32.mrf.mxu0 }
 0x56e   :  { %v4977_v32 = vadd.f32 %v5392_v31, %v1529_v61 }
 0x56f   :  { %v1526_v8 = vpop.f32.mrf.mxu0 }
 0x570   :  { %5393 = vst [vmem:[#allocation17_spill] sm:$0xff] %v4977_v32  ;;  %1546 = vperm.xlu0 %4038, %v4977_v32   ;;  %1538 = vperm.xlu1 %4041, %v4977_v32  }
 0x571   :  { %v3919_v23 = vpop.f32.mrf.mxu0 }
 0x5eb   :  { %v1547_v26 = vpop.permute.xlu0 %1546  ;;  %v1539_v33 = vpop.permute.xlu1 %1538 }
 0x5ec   :  { %v1549_v14 = vmul.f32 %v1547_v26, %v5394_v49  ;;  %v1550_v24 = vmul.f32 %v1547_v26, %v5395_v27  ;;  %v1541_v50 = vmul.f32 %v1539_v33, %v5396_v45  ;;  %v1542_v22 = vmul.f32 %v1539_v33, %v5382_v25 }
 0x5ed   :  { %v1551_v61 = vmul.f32 %v1547_v26, %v4695_v60  ;;  %v1543_v8 = vmul.f32 %v1539_v33, %v4693_v59  ;;  %v1552_v27 = vmul.f32 %v1547_v26, %v4705_v44  ;;  %v1544_v45 = vmul.f32 %v1539_v33, %v4703_v48 }
 0x5ee   :  { %v1553_v41 = vadd.f32 %v1549_v14, %v1541_v50  ;;  %v1554_v30 = vadd.f32 %v1550_v24, %v1542_v22 }
 0x5ef   :  { %v1555_v46 = vadd.f32 %v1551_v61, %v1543_v8  ;;  %v1556_v24 = vadd.f32 %v1552_v27, %v1544_v45  ;;  %v4162_v8 = vld [vmem:[#allocation5 + $0x128] ss:$20 sps:$4 sm:$0xff]  }
 0x5f0   :  { %v1557_v40 = vadd.f32 %v1553_v41, %v1441_v53  ;;  %v1558_v31 = vadd.f32 %v1554_v30, %v1443_v20 }
 0x5f1   :  { %v1559_v14 = vadd.f32 %v1555_v46, %v1482_v29  ;;  %v1560_v22 = vadd.f32 %v1556_v24, %v1484_v21  ;;  %v4165_v24 = vld [vmem:[#allocation5 + $0xb0] ss:$20 sps:$4 sm:$0xff]  }
 0x5f2   :  { %v1561_v23 = vadd.f32 %v1557_v40, %v4691_v56  ;;  %v1562_v32 = vadd.f32 %v1558_v31, %v4697_v63 }
 0x5f3   :  { %v1563_v50 = vadd.f32 %v1559_v14, %v4707_v58  ;;  %v1564_v20 = vadd.f32 %v1560_v22, %v4712_v42  ;;  %v4163_v14 = vld [vmem:[#allocation5 + $0x100] ss:$20 sps:$4 sm:$0xff]  }
 0x5f4   :  { %v3605_v49 = vmul.f32 -1.442695, %v1561_v23  ;;  %v3606_v17 = vmul.f32 -1.442695, %v1562_v32 }
 0x5f5   :  { %v3607_v53 = vmul.f32 -1.442695, %v1563_v50 }
 0x5f6   :  { %4298 = vpow2.f32 %v3605_v49 }
 0x5f7   :  { %4300 = vpow2.f32 %v3606_v17 }
 0x5f8   :  { %4302 = vpow2.f32 %v3607_v53 }
 0x5f9   :  { %4304 = vtanh.f32 %v1564_v20 }
 0x603   :  { %v4299_v40 = vpop.eup %4298 }
 0x604   :  { %v4301_v41 = vpop.eup %4300  ;;  %v1574_v31 = vadd.f32 1.0, %v4299_v40 }
 0x605   :  { %v1575_v30 = vadd.f32 1.0, %v4301_v41  ;;  %v4303_v32 = vpop.eup %4302 }
 0x606   :  { %4306 = vrcp.f32 %v1574_v31  ;;  %v4305_v26 = vpop.eup %4304  ;;  %v1576_v46 = vadd.f32 1.0, %v4303_v32 }
 0x607   :  { %4308 = vrcp.f32 %v1575_v30 }
 0x608   :  { %4310 = vrcp.f32 %v1576_v46 }
 0x613   :  { %v4307_v33 = vpop.eup %4306 }
 0x614   :  { %v4309_v17 = vpop.eup %4308  ;;  %v1585_v29 = vmul.f32 %v4307_v33, %v4305_v26 }
 0x615   :  { %v1584_v49 = vmul.f32 %v4309_v17, %v4928_v28  ;;  %v4311_v27 = vpop.eup %4310  ;;  %v4164_v28 = vld [vmem:[#allocation5 + $0xd8] ss:$20 sps:$4 sm:$0xff]  }
 0x617   :  { %v4994_v21 = vadd.f32 %v1585_v29, %v1584_v49 }
 0x619   :  { %4312 = vtanh.f32 %v4994_v21 }
 0x626   :  { %v4313_v45 = vpop.eup %4312 }
 0x627   :  { %v1588_v61 = vmul.f32 %v4313_v45, %v4311_v27 }
 0x629   :  { %v1589_v23 = vpack.c.bf16 %v1588_v61, %v1588_v61 }
 0x62b   :  { %1879 = vmatmul.mubr.bf16.vlgmr.msra.gmra.mxu1 %v1589_v23  ;;  %1920 = vmatmul.mubr.bf16.vlgmr.msra.gmra.mxu0 %v1589_v23 }
 0x62c   :  { %3921 = vmatpush3.bf16.msra.mxu1 %v4162_v8  ;;  %3936 = vmatprep.mubr.msk.bf16.mxu1 %vm4473_vm0, %v5378_v0 }
 0x62d   :  { %3922 = vmatprep.subr.bf16.mxu1 %v5378_v0  ;;  %2286 = vmatpush1.bf16.msra.mxu0 %v4813_v47  ;;  %v4166_v47 = vld [vmem:[#allocation5 + $0x88] ss:$20 sps:$4 sm:$0xff]  }
 0x62e   :  { %2287 = vmatprep.subr.bf16.mxu0 %v4821_v52  ;;  %2317 = vmatprep.mubr.bf16.mxu0 %v5379_v43  ;;  %v4167_v52 = vld [vmem:[#allocation5 + $0x60] ss:$20 sps:$4 sm:$0xff]  }
 0x630   :  { %3923 = vmatpush3.bf16.msra.mxu1 %v4163_v14 }
 0x631   :  { %3924 = vmatprep.subr.bf16.mxu1 %v5378_v0  ;;  %2288 = vmatpush1.bf16.msra.mxu0 %v4828_v36  ;;  %v4168_v36 = vld [vmem:[#allocation5 + $0x38] ss:$20 sps:$4 sm:$0xff]  }
 0x632   :  { %2289 = vmatprep.subr.bf16.mxu0 %v4834_v57  ;;  %v4169_v57 = vld [vmem:[#allocation5 + $0x10] ss:$20 sps:$4 sm:$0xff]  }
 0x634   :  { %3925 = vmatpush3.bf16.msra.mxu1 %v4164_v28 }
 0x635   :  { %3926 = vmatprep.subr.bf16.mxu1 %v5378_v0  ;;  %2290 = vmatpush1.bf16.msra.mxu0 %v4840_v1 }
 0x636   :  { %2291 = vmatprep.subr.bf16.mxu0 %v4846_v35 }
 0x638   :  { %3927 = vmatpush3.bf16.msra.mxu1 %v4165_v24 }
 0x639   :  { %3928 = vmatprep.subr.bf16.mxu1 %v5378_v0  ;;  %2292 = vmatpush1.bf16.msra.mxu0 %v4852_v51 }
 0x63a   :  { %2293 = vmatprep.subr.bf16.mxu0 %v4858_v5  ;;  %v5399_v5 = vld [vmem:[#allocation17_spill] sm:$0xff] }
 0x63c   :  { %3929 = vmatpush3.bf16.msra.mxu1 %v4166_v47 }
 0x63d   :  { %3930 = vmatprep.subr.bf16.mxu1 %v5378_v0  ;;  %2294 = vmatpush1.bf16.msra.mxu0 %v4864_v9 }
 0x63e   :  { %2295 = vmatprep.subr.bf16.mxu0 %v4870_v4 }
 0x640   :  { %3931 = vmatpush3.bf16.msra.mxu1 %v4167_v52 }
 0x641   :  { %3932 = vmatprep.subr.bf16.mxu1 %v5378_v0  ;;  %2296 = vmatpush1.bf16.msra.mxu0 %v4876_v10 }
 0x642   :  { %2297 = vmatprep.subr.bf16.mxu0 %v4882_v12 }
 0x644   :  { %3933 = vmatpush3.bf16.msra.mxu1 %v4168_v36 }
 0x645   :  { %3934 = vmatprep.subr.bf16.mxu1 %v5378_v0  ;;  %2298 = vmatpush1.bf16.msra.mxu0 %v4888_v15 }
 0x646   :  { %2299 = vmatprep.subr.bf16.mxu0 %v4894_v38 }
 0x648   :  { %3935 = vmatpush3.bf16.msra.mxu1 %v4169_v57 }
 0x649   :  { %2326 = vmatprep.subr.bf16.mxu1 %v4819_v55  ;;  %2300 = vmatpush1.bf16.msra.mxu0 %v4900_v19  ;;  %v5398_v55 = vld [vmem:[#allocation19_spill] sm:$0xff]  ;;  %v5404_v19 = vld [vmem:[#allocation12_spill] sm:$0xff] }
 0x64a   :  { %3940 = vmatprep.subr.bf16.mxu0 %v5378_v0 }
 0x64b   :  { %3937 = vmatmul.mubr.bf16.vlgmr.msra.gmra.mxu1 %v1589_v23 }
 0x64c   :  { %2327 = vmatpush1.bf16.msra.mxu1 %v4817_v54  ;;  %2358 = vmatprep.mubr.bf16.mxu1 %v5379_v43  ;;  %v5397_v54 = vld [vmem:[#allocation18_spill] sm:$0xff] }
 0x64d   :  { %2328 = vmatprep.subr.bf16.mxu1 %v4824_v18 }
 0x650   :  { %2329 = vmatpush1.bf16.msra.mxu1 %v4832_v39 }
 0x651   :  { %2330 = vmatprep.subr.bf16.mxu1 %v4837_v62 }
 0x654   :  { %2331 = vmatpush1.bf16.msra.mxu1 %v4844_v37 }
 0x655   :  { %2332 = vmatprep.subr.bf16.mxu1 %v4849_v34 }
 0x658   :  { %2333 = vmatpush1.bf16.msra.mxu1 %v4856_v3 }
 0x659   :  { %2334 = vmatprep.subr.bf16.mxu1 %v4861_v7 }
 0x65c   :  { %2335 = vmatpush1.bf16.msra.mxu1 %v4868_v2  ;;  %v5400_v2 = vld [vmem:[#allocation16_spill] sm:$0xff] }
 0x65d   :  { %2336 = vmatprep.subr.bf16.mxu1 %v4873_v6 }
 0x660   :  { %2337 = vmatpush1.bf16.msra.mxu1 %v4880_v11 }
 0x661   :  { %2338 = vmatprep.subr.bf16.mxu1 %v4885_v13  ;;  %v5402_v13 = vld [vmem:[#allocation13_spill] sm:$0xff] }
 0x664   :  { %2339 = vmatpush1.bf16.msra.mxu1 %v4892_v16  ;;  %v5403_v16 = vld [vmem:[#allocation15_spill] sm:$0xff] }
 0x665   :  { %2340 = vmatprep.subr.bf16.mxu1 %v5397_v54 }
 0x668   :  { %2341 = vmatpush1.bf16.msra.mxu1 %v5398_v55 }
 0x6eb   :  { %v1880_v18 = vpop.f32.mrf.mxu1  ;;  %v1921_v39 = vpop.f32.mrf.mxu0 }
 0x6ed   :  { %v1882_v62 = vpop.f32.mrf.mxu1  ;;  %v1923_v1 = vpop.f32.mrf.mxu0 }
 0x6ef   :  { %v1884_v37 = vpop.f32.mrf.mxu1  ;;  %v1925_v35 = vpop.f32.mrf.mxu0 }
 0x6f1   :  { %v1885_v34 = vpop.f32.mrf.mxu1  ;;  %v1926_v51 = vpop.f32.mrf.mxu0 }
 0x6f2   :  { %v4170_v51 = vld [vmem:[#allocation5 + $0x128] ss:$20 sps:$4 sm:$0xff]  }
 0x70b   :  { %v1962_v3 = vpop.f32.mrf.mxu1 }
 0x70c   :  { %v1968_v7 = vadd.f32 %v1962_v3, %v5399_v5 }
 0x70d   :  { %v3938_v9 = vpop.f32.mrf.mxu1 }
 0x70e   :  { %v5042_v4 = vadd.f32 %v5400_v2, %v1968_v7  ;;  %v4171_v7 = vld [vmem:[#allocation5 + $0x100] ss:$20 sps:$4 sm:$0xff]   ;;  %v4173_v9 = vld [vmem:[#allocation5 + $0xb0] ss:$20 sps:$4 sm:$0xff]   ;;  %v4174_v2 = vld [vmem:[#allocation5 + $0x88] ss:$20 sps:$4 sm:$0xff]  }
 0x70f   :  { %v1965_v6 = vpop.f32.mrf.mxu1 }
 0x710   :  { %5401 = vst [vmem:[#allocation18_spill] sm:$0xff] %v5042_v4  ;;  %1985 = vperm.xlu0 %4038, %v5042_v4   ;;  %1977 = vperm.xlu1 %4041, %v5042_v4   ;;  %v4175_v6 = vld [vmem:[#allocation5 + $0x60] ss:$20 sps:$4 sm:$0xff]  }
 0x711   :  { %v3939_v10 = vpop.f32.mrf.mxu1 }
 0x712   :  { %v4176_v10 = vld [vmem:[#allocation5 + $0x38] ss:$20 sps:$4 sm:$0xff]  }
 0x78b   :  { %v1986_v11 = vpop.permute.xlu0 %1985  ;;  %v1978_v12 = vpop.permute.xlu1 %1977 }
 0x78c   :  { %v1988_v15 = vmul.f32 %v1986_v11, %v5402_v13  ;;  %v1989_v38 = vmul.f32 %v1986_v11, %v5403_v16  ;;  %v1980_v50 = vmul.f32 %v1978_v12, %v5404_v19  ;;  %v1981_v22 = vmul.f32 %v1978_v12, %v5382_v25 }
 0x78d   :  { %v1990_v40 = vmul.f32 %v1986_v11, %v4695_v60  ;;  %v1982_v41 = vmul.f32 %v1978_v12, %v4693_v59  ;;  %v1991_v29 = vmul.f32 %v1986_v11, %v4705_v44  ;;  %v1983_v49 = vmul.f32 %v1978_v12, %v4703_v48  ;;  %v4177_v11 = vld [vmem:[#allocation5 + $0x10] ss:$20 sps:$4 sm:$0xff]  }
 0x78e   :  { %v1992_v53 = vadd.f32 %v1988_v15, %v1980_v50  ;;  %v1993_v20 = vadd.f32 %v1989_v38, %v1981_v22 }
 0x78f   :  { %v1994_v33 = vadd.f32 %v1990_v40, %v1982_v41  ;;  %v1995_v45 = vadd.f32 %v1991_v29, %v1983_v49  ;;  %v5091_v29 = vld [vmem:[#allocation5 + $0x11c] ss:$20 sps:$4 sm:$0xff]   ;;  %v5093_v49 = vld [vmem:[#allocation5 + $0x120] ss:$20 sps:$4 sm:$0xff]  }
 0x790   :  { %v1996_v31 = vadd.f32 %v1992_v53, %v1880_v18  ;;  %v1997_v30 = vadd.f32 %v1993_v20, %v1882_v62  ;;  %2724 = vmatprep.subr.bf16.mxu1 %v5091_v29 }
 0x791   :  { %v1998_v27 = vadd.f32 %v1994_v33, %v1921_v39  ;;  %v1999_v8 = vadd.f32 %v1995_v45, %v1923_v1  ;;  %v5097_v45 = vld [vmem:[#allocation5 + $0xf4] ss:$20 sps:$4 sm:$0xff]  }
 0x792   :  { %v2000_v32 = vadd.f32 %v1996_v31, %v4691_v56  ;;  %v2001_v26 = vadd.f32 %v1997_v30, %v4697_v63 }
 0x793   :  { %v2002_v61 = vadd.f32 %v1998_v27, %v4707_v58  ;;  %v2003_v14 = vadd.f32 %v1999_v8, %v4712_v42  ;;  %v5095_v27 = vld [vmem:[#allocation5 + $0x124] ss:$20 sps:$4 sm:$0xff]  }
 0x794   :  { %v3648_v17 = vmul.f32 -1.442695, %v2000_v32  ;;  %v3649_v46 = vmul.f32 -1.442695, %v2001_v26  ;;  %v5082_v32 = vld [vmem:[#allocation7 + $0x4] ss:$0 sm:$0xff] }
 0x795   :  { %v3650_v23 = vmul.f32 -1.442695, %v2002_v61  ;;  %5405 = vst [vmem:[#allocation19_spill] sm:$0xff] %v5082_v32  ;;  %v5100_v61 = vld [vmem:[#allocation5 + $0xfc] ss:$20 sps:$4 sm:$0xff]  }
 0x796   :  { %4314 = vpow2.f32 %v3648_v17  ;;  %v5104_v8 = vld [vmem:[#allocation5 + $0xf0] ss:$20 sps:$4 sm:$0xff]  }
 0x797   :  { %4316 = vpow2.f32 %v3649_v46  ;;  %v5089_v46 = vld [vmem:[#allocation5 + $0x118] ss:$20 sps:$4 sm:$0xff]  }
 0x798   :  { %4318 = vpow2.f32 %v3650_v23  ;;  %v5108_v23 = vld [vmem:[#allocation5 + $0xf8] ss:$20 sps:$4 sm:$0xff]  }
 0x799   :  { %4320 = vtanh.f32 %v2003_v14  ;;  %v5110_v14 = vld [vmem:[#allocation5 + $0xcc] ss:$20 sps:$4 sm:$0xff]  }
 0x7a3   :  { %v4315_v28 = vpop.eup %4314 }
 0x7a4   :  { %v4317_v24 = vpop.eup %4316  ;;  %v2013_v47 = vadd.f32 1.0, %v4315_v28  ;;  %v5113_v28 = vld [vmem:[#allocation5 + $0xd4] ss:$20 sps:$4 sm:$0xff]  }
 0x7a5   :  { %v2014_v52 = vadd.f32 1.0, %v4317_v24  ;;  %v4319_v36 = vpop.eup %4318  ;;  %v5116_v24 = vld [vmem:[#allocation5 + $0xc8] ss:$20 sps:$4 sm:$0xff]  }
 0x7a6   :  { %4322 = vrcp.f32 %v2013_v47  ;;  %v4321_v57 = vpop.eup %4320  ;;  %v2015_v18 = vadd.f32 1.0, %v4319_v36  ;;  %v5120_v47 = vld [vmem:[#allocation5 + $0xd0] ss:$20 sps:$4 sm:$0xff]   ;;  %v5125_v36 = vld [vmem:[#allocation5 + $0xac] ss:$20 sps:$4 sm:$0xff]  }
 0x7a7   :  { %4324 = vrcp.f32 %v2014_v52  ;;  %v5122_v52 = vld [vmem:[#allocation5 + $0xa4] ss:$20 sps:$4 sm:$0xff]  }
 0x7a8   :  { %4326 = vrcp.f32 %v2015_v18  ;;  %v5137_v18 = vld [vmem:[#allocation5 + $0x84] ss:$20 sps:$4 sm:$0xff]  }
 0x7b3   :  { %v4323_v54 = vpop.eup %4322 }
 0x7b4   :  { %v4325_v55 = vpop.eup %4324  ;;  %v2024_v39 = vmul.f32 %v4323_v54, %v4321_v57  ;;  %v5128_v57 = vld [vmem:[#allocation5 + $0xa0] ss:$20 sps:$4 sm:$0xff]   ;;  %v5132_v54 = vld [vmem:[#allocation5 + $0xa8] ss:$20 sps:$4 sm:$0xff]  }
 0x7b5   :  { %v2023_v62 = vmul.f32 %v4325_v55, %v4994_v21  ;;  %v4327_v37 = vpop.eup %4326  ;;  %v4172_v21 = vld [vmem:[#allocation5 + $0xd8] ss:$20 sps:$4 sm:$0xff]   ;;  %v5134_v55 = vld [vmem:[#allocation5 + $0x7c] ss:$20 sps:$4 sm:$0xff]  }
 0x7b7   :  { %v5059_v1 = vadd.f32 %v2024_v39, %v2023_v62  ;;  %v5140_v39 = vld [vmem:[#allocation5 + $0x78] ss:$20 sps:$4 sm:$0xff]   ;;  %v5144_v62 = vld [vmem:[#allocation5 + $0x80] ss:$20 sps:$4 sm:$0xff]  }
 0x7b9   :  { %4328 = vtanh.f32 %v5059_v1 }
 0x7c6   :  { %v4329_v35 = vpop.eup %4328 }
 0x7c7   :  { %v2027_v34 = vmul.f32 %v4329_v35, %v4327_v37  ;;  %v5146_v37 = vld [vmem:[#allocation5 + $0x54] ss:$20 sps:$4 sm:$0xff]   ;;  %v5149_v35 = vld [vmem:[#allocation5 + $0x5c] ss:$20 sps:$4 sm:$0xff]  }
 0x7c9   :  { %v2028_v3 = vpack.c.bf16 %v2027_v34, %v2027_v34  ;;  %v5152_v34 = vld [vmem:[#allocation5 + $0x50] ss:$20 sps:$4 sm:$0xff]  }
 0x7cb   :  { %2318 = vmatmul.mubr.bf16.vlgmr.msra.gmra.mxu0 %v2028_v3  ;;  %2359 = vmatmul.mubr.bf16.vlgmr.msra.gmra.mxu1 %v2028_v3 }
 0x7cc   :  { %3941 = vmatpush3.bf16.msra.mxu0 %v4170_v51  ;;  %3956 = vmatprep.mubr.msk.bf16.mxu0 %vm4473_vm0, %v5378_v0  ;;  %v5156_v51 = vld [vmem:[#allocation5 + $0x58] ss:$20 sps:$4 sm:$0xff]  }
 0x7cd   :  { %3942 = vmatprep.subr.bf16.mxu0 %v5378_v0  ;;  %2756 = vmatprep.mubr.bf16.mxu1 %v5379_v43 }
 0x7ce   :  { %2725 = vmatpush1.bf16.msra.mxu1 %v5089_v46 }
 0x7cf   :  { %2726 = vmatprep.subr.bf16.mxu1 %v5097_v45 }
 0x7d0   :  { %3943 = vmatpush3.bf16.msra.mxu0 %v4171_v7  ;;  %v5161_v7 = vld [vmem:[#allocation5 + $0x34] ss:$20 sps:$4 sm:$0xff]  }
 0x7d1   :  { %3944 = vmatprep.subr.bf16.mxu0 %v5378_v0 }
 0x7d2   :  { %2727 = vmatpush1.bf16.msra.mxu1 %v5104_v8 }
 0x7d3   :  { %2728 = vmatprep.subr.bf16.mxu1 %v5110_v14 }
 0x7d4   :  { %3945 = vmatpush3.bf16.msra.mxu0 %v4172_v21  ;;  %v5164_v21 = vld [vmem:[#allocation5 + $0x28] ss:$20 sps:$4 sm:$0xff]  }
 0x7d5   :  { %3946 = vmatprep.subr.bf16.mxu0 %v5378_v0 }
 0x7d6   :  { %2729 = vmatpush1.bf16.msra.mxu1 %v5116_v24 }
 0x7d7   :  { %2730 = vmatprep.subr.bf16.mxu1 %v5122_v52 }
 0x7d8   :  { %3947 = vmatpush3.bf16.msra.mxu0 %v4173_v9  ;;  %v5168_v9 = vld [vmem:[#allocation5 + $0x30] ss:$20 sps:$4 sm:$0xff]  }
 0x7d9   :  { %3948 = vmatprep.subr.bf16.mxu0 %v5378_v0 }
 0x7da   :  { %2731 = vmatpush1.bf16.msra.mxu1 %v5128_v57 }
 0x7db   :  { %2732 = vmatprep.subr.bf16.mxu1 %v5134_v55 }
 0x7dc   :  { %3949 = vmatpush3.bf16.msra.mxu0 %v4174_v2  ;;  %v5170_v2 = vld [vmem:[#allocation5 + $0x4] ss:$20 sps:$4 sm:$0xff]  }
 0x7dd   :  { %3950 = vmatprep.subr.bf16.mxu0 %v5378_v0 }
 0x7de   :  { %2733 = vmatpush1.bf16.msra.mxu1 %v5140_v39 }
 0x7df   :  { %2734 = vmatprep.subr.bf16.mxu1 %v5146_v37 }
 0x7e0   :  { %3951 = vmatpush3.bf16.msra.mxu0 %v4175_v6  ;;  %v5173_v6 = vld [vmem:[#allocation5 + $0xc] ss:$20 sps:$4 sm:$0xff]  }
 0x7e1   :  { %3952 = vmatprep.subr.bf16.mxu0 %v5378_v0 }
 0x7e2   :  { %2735 = vmatpush1.bf16.msra.mxu1 %v5152_v34 }
 0x7e4   :  { %3953 = vmatpush3.bf16.msra.mxu0 %v4176_v10  ;;  %v5176_v10 = vld [vmem:[#allocation5] ss:$20 sps:$4 sm:$0xff]  }
 0x7e5   :  { %3954 = vmatprep.subr.bf16.mxu0 %v5378_v0 }
 0x7e8   :  { %3955 = vmatpush3.bf16.msra.mxu0 %v4177_v11  ;;  %v5180_v11 = vld [vmem:[#allocation5 + $0x8] ss:$20 sps:$4 sm:$0xff]  }
 0x7e9   :  { %2765 = vmatprep.subr.bf16.mxu0 %v5095_v27  ;;  %5407 = vst [vmem:[#allocation20_spill] sm:$0xff] %v5180_v11 }
 0x7eb   :  { %3957 = vmatmul.mubr.bf16.vlgmr.msra.gmra.mxu0 %v2028_v3  ;;  %v5158_v3 = vld [vmem:[#allocation5 + $0x2c] ss:$20 sps:$4 sm:$0xff]  }
 0x7ec   :  { %2797 = vmatprep.mubr.bf16.mxu0 %v5379_v43  ;;  %2766 = vmatpush1.bf16.msra.mxu0 %v5093_v49 }
 0x7ed   :  { %2767 = vmatprep.subr.bf16.mxu0 %v5100_v61  ;;  %2736 = vmatprep.subr.bf16.mxu1 %v5158_v3 }
 0x7ee   :  { %2737 = vmatpush1.bf16.msra.mxu1 %v5164_v21 }
 0x7ef   :  { %2738 = vmatprep.subr.bf16.mxu1 %v5170_v2 }
 0x7f0   :  { %2768 = vmatpush1.bf16.msra.mxu0 %v5108_v23 }
 0x7f1   :  { %2769 = vmatprep.subr.bf16.mxu0 %v5113_v28 }
 0x7f2   :  { %2739 = vmatpush1.bf16.msra.mxu1 %v5176_v10 }
 0x7f3   :  { %3960 = vmatprep.subr.bf16.mxu1 %v5378_v0 }
 0x7f4   :  { %2770 = vmatpush1.bf16.msra.mxu0 %v5120_v47 }
 0x7f5   :  { %2771 = vmatprep.subr.bf16.mxu0 %v5125_v36 }
 0x7f8   :  { %2772 = vmatpush1.bf16.msra.mxu0 %v5132_v54 }
 0x7f9   :  { %2773 = vmatprep.subr.bf16.mxu0 %v5137_v18 }
 0x7fc   :  { %2774 = vmatpush1.bf16.msra.mxu0 %v5144_v62 }
 0x7fd   :  { %2775 = vmatprep.subr.bf16.mxu0 %v5149_v35 }
 0x800   :  { %2776 = vmatpush1.bf16.msra.mxu0 %v5156_v51 }
 0x801   :  { %2777 = vmatprep.subr.bf16.mxu0 %v5161_v7 }
 0x804   :  { %2778 = vmatpush1.bf16.msra.mxu0 %v5168_v9 }
 0x805   :  { %2779 = vmatprep.subr.bf16.mxu0 %v5173_v6 }
 0x808   :  { %2780 = vmatpush1.bf16.msra.mxu0 %v5180_v11 }
 0x809   :  { %3163 = vmatprep.subr.bf16.mxu0 %v5091_v29 }
 0x88b   :  { %v5073_v12 = vpop.f32.mrf.mxu0  ;;  %v5075_v15 = vpop.f32.mrf.mxu1 }
 0x88d   :  { %v5077_v38 = vpop.f32.mrf.mxu0  ;;  %v5079_v50 = vpop.f32.mrf.mxu1 }
 0x88f   :  { %v2323_v22 = vpop.f32.mrf.mxu0  ;;  %v2364_v53 = vpop.f32.mrf.mxu1 }
 0x891   :  { %v2324_v20 = vpop.f32.mrf.mxu0  ;;  %v2365_v40 = vpop.f32.mrf.mxu1 }
 0x8ab   :  { %v2401_v41 = vpop.f32.mrf.mxu0 }
 0x8ac   :  { %v2407_v31 = vadd.f32 %v2401_v41, %v5042_v4 }
 0x8ad   :  { %v3958_v30 = vpop.f32.mrf.mxu0 }
 0x8ae   :  { %v5085_v26 = vadd.f32 %v5082_v32, %v2407_v31 }
 0x8af   :  { %v2404_v33 = vpop.f32.mrf.mxu0 }
 0x8b0   :  { %5406 = vst [vmem:[#allocation16_spill] sm:$0xff] %v5085_v26  ;;  %2424 = vperm.xlu0 %4038, %v5085_v26   ;;  %2416 = vperm.xlu1 %4041, %v5085_v26  }
 0x8b1   :  { %v3959_v17 = vpop.f32.mrf.mxu0 }
 0x92b   :  { %v2425_v22 = vpop.permute.xlu0 %2424  ;;  %v2417_v53 = vpop.permute.xlu1 %2416 }
 0x92c   :  { %v2427_v20 = vmul.f32 %v2425_v22, %v5402_v13  ;;  %v2428_v40 = vmul.f32 %v2425_v22, %v5403_v16  ;;  %v2419_v41 = vmul.f32 %v2417_v53, %v5404_v19  ;;  %v2420_v31 = vmul.f32 %v2417_v53, %v5382_v25 }
 0x92d   :  { %v2429_v17 = vmul.f32 %v2425_v22, %v4695_v60  ;;  %v2421_v4 = vmul.f32 %v2417_v53, %v4693_v59  ;;  %v2430_v19 = vmul.f32 %v2425_v22, %v4705_v44 }
 0x92e   :  { %v2431_v30 = vadd.f32 %v2427_v20, %v2419_v41  ;;  %v2432_v33 = vadd.f32 %v2428_v40, %v2420_v31  ;;  %v2422_v20 = vmul.f32 %v2417_v53, %v4703_v48 }
 0x92f   :  { %v2433_v26 = vadd.f32 %v2429_v17, %v2421_v4 }
 0x930   :  { %v2435_v5 = vadd.f32 %v2431_v30, %v5073_v12  ;;  %v2436_v29 = vadd.f32 %v2432_v33, %v5077_v38  ;;  %v2434_v41 = vadd.f32 %v2430_v19, %v2422_v20  ;;  %v4226_v20 = vld [vmem:[#allocation5 + $0x128] ss:$20 sps:$4 sm:$0xff]  }
 0x931   :  { %v2437_v40 = vadd.f32 %v2433_v26, %v5075_v15 }
 0x932   :  { %v2439_v32 = vadd.f32 %v2435_v5, %v4691_v56  ;;  %v2440_v13 = vadd.f32 %v2436_v29, %v4697_v63  ;;  %v2438_v38 = vadd.f32 %v2434_v41, %v5079_v50  ;;  %v4227_v41 = vld [vmem:[#allocation5 + $0x100] ss:$20 sps:$4 sm:$0xff]  }
 0x933   :  { %v2441_v12 = vadd.f32 %v2437_v40, %v4707_v58 }
 0x934   :  { %v3691_v16 = vmul.f32 -1.442695, %v2439_v32  ;;  %v3692_v11 = vmul.f32 -1.442695, %v2440_v13  ;;  %v2442_v5 = vadd.f32 %v2438_v38, %v4712_v42 }
 0x935   :  { %v3693_v31 = vmul.f32 -1.442695, %v2441_v12  ;;  %v4229_v12 = vld [vmem:[#allocation5 + $0xb0] ss:$20 sps:$4 sm:$0xff]  }
 0x936   :  { %4330 = vpow2.f32 %v3691_v16 }
 0x937   :  { %4332 = vpow2.f32 %v3692_v11 }
 0x938   :  { %4334 = vpow2.f32 %v3693_v31 }
 0x939   :  { %4336 = vtanh.f32 %v2442_v5 }
 0x943   :  { %v4331_v30 = vpop.eup %4330 }
 0x944   :  { %v4333_v4 = vpop.eup %4332  ;;  %v2452_v13 = vadd.f32 1.0, %v4331_v30 }
 0x945   :  { %v2453_v32 = vadd.f32 1.0, %v4333_v4  ;;  %v4335_v16 = vpop.eup %4334 }
 0x946   :  { %4338 = vrcp.f32 %v2452_v13  ;;  %v4337_v11 = vpop.eup %4336  ;;  %v2454_v19 = vadd.f32 1.0, %v4335_v16 }
 0x947   :  { %4340 = vrcp.f32 %v2453_v32 }
 0x948   :  { %4342 = vrcp.f32 %v2454_v19 }
 0x953   :  { %v4339_v22 = vpop.eup %4338 }
 0x954   :  { %v4341_v15 = vpop.eup %4340  ;;  %v2463_v26 = vmul.f32 %v4339_v22, %v4337_v11 }
 0x955   :  { %v2462_v53 = vmul.f32 %v4341_v15, %v5059_v1  ;;  %v4343_v33 = vpop.eup %4342  ;;  %v4228_v1 = vld [vmem:[#allocation5 + $0xd8] ss:$20 sps:$4 sm:$0xff]  }
 0x957   :  { %v5204_v50 = vadd.f32 %v2463_v26, %v2462_v53 }
 0x959   :  { %4344 = vtanh.f32 %v5204_v50 }
 0x966   :  { %v4345_v17 = vpop.eup %4344 }
 0x967   :  { %v2466_v29 = vmul.f32 %v4345_v17, %v4343_v33 }
 0x969   :  { %v2467_v40 = vpack.c.bf16 %v2466_v29, %v2466_v29 }
 0x96b   :  { %2757 = vmatmul.mubr.bf16.vlgmr.msra.gmra.mxu1 %v2467_v40  ;;  %2798 = vmatmul.mubr.bf16.vlgmr.msra.gmra.mxu0 %v2467_v40 }
 0x96c   :  { %3961 = vmatpush3.bf16.msra.mxu1 %v4226_v20  ;;  %3976 = vmatprep.mubr.msk.bf16.mxu1 %vm4473_vm0, %v5378_v0 }
 0x96d   :  { %3962 = vmatprep.subr.bf16.mxu1 %v5378_v0  ;;  %3164 = vmatpush1.bf16.msra.mxu0 %v5089_v46  ;;  %v4230_v46 = vld [vmem:[#allocation5 + $0x88] ss:$20 sps:$4 sm:$0xff]  }
 0x96e   :  { %3165 = vmatprep.subr.bf16.mxu0 %v5097_v45  ;;  %3195 = vmatprep.mubr.bf16.mxu0 %v5379_v43  ;;  %v4231_v45 = vld [vmem:[#allocation5 + $0x60] ss:$20 sps:$4 sm:$0xff]  }
 0x970   :  { %3963 = vmatpush3.bf16.msra.mxu1 %v4227_v41 }
 0x971   :  { %3964 = vmatprep.subr.bf16.mxu1 %v5378_v0  ;;  %3166 = vmatpush1.bf16.msra.mxu0 %v5104_v8  ;;  %v4232_v8 = vld [vmem:[#allocation5 + $0x38] ss:$20 sps:$4 sm:$0xff]  }
 0x972   :  { %3167 = vmatprep.subr.bf16.mxu0 %v5110_v14  ;;  %v4233_v14 = vld [vmem:[#allocation5 + $0x10] ss:$20 sps:$4 sm:$0xff]  }
 0x974   :  { %3965 = vmatpush3.bf16.msra.mxu1 %v4228_v1 }
 0x975   :  { %3966 = vmatprep.subr.bf16.mxu1 %v5378_v0  ;;  %3168 = vmatpush1.bf16.msra.mxu0 %v5116_v24 }
 0x976   :  { %3169 = vmatprep.subr.bf16.mxu0 %v5122_v52 }
 0x978   :  { %3967 = vmatpush3.bf16.msra.mxu1 %v4229_v12 }
 0x979   :  { %3968 = vmatprep.subr.bf16.mxu1 %v5378_v0  ;;  %3170 = vmatpush1.bf16.msra.mxu0 %v5128_v57  ;;  %v5409_v57 = vld [vmem:[#allocation16_spill] sm:$0xff] }
 0x97a   :  { %3171 = vmatprep.subr.bf16.mxu0 %v5134_v55 }
 0x97c   :  { %3969 = vmatpush3.bf16.msra.mxu1 %v4230_v46 }
 0x97d   :  { %3970 = vmatprep.subr.bf16.mxu1 %v5378_v0  ;;  %3172 = vmatpush1.bf16.msra.mxu0 %v5140_v39 }
 0x97e   :  { %3173 = vmatprep.subr.bf16.mxu0 %v5146_v37 }
 0x980   :  { %3971 = vmatpush3.bf16.msra.mxu1 %v4231_v45 }
 0x981   :  { %3972 = vmatprep.subr.bf16.mxu1 %v5378_v0  ;;  %3174 = vmatpush1.bf16.msra.mxu0 %v5152_v34 }
 0x982   :  { %3175 = vmatprep.subr.bf16.mxu0 %v5158_v3 }
 0x984   :  { %3973 = vmatpush3.bf16.msra.mxu1 %v4232_v8 }
 0x985   :  { %3974 = vmatprep.subr.bf16.mxu1 %v5378_v0  ;;  %3176 = vmatpush1.bf16.msra.mxu0 %v5164_v21 }
 0x986   :  { %3177 = vmatprep.subr.bf16.mxu0 %v5170_v2 }
 0x988   :  { %3975 = vmatpush3.bf16.msra.mxu1 %v4233_v14 }
 0x989   :  { %3204 = vmatprep.subr.bf16.mxu1 %v5095_v27  ;;  %3178 = vmatpush1.bf16.msra.mxu0 %v5176_v10 }
 0x98a   :  { %3980 = vmatprep.subr.bf16.mxu0 %v5378_v0 }
 0x98b   :  { %3977 = vmatmul.mubr.bf16.vlgmr.msra.gmra.mxu1 %v2467_v40 }
 0x98c   :  { %3205 = vmatpush1.bf16.msra.mxu1 %v5093_v49  ;;  %3236 = vmatprep.mubr.bf16.mxu1 %v5379_v43  ;;  %v5408_v43 = vld [vmem:[#allocation20_spill] sm:$0xff] }
 0x98d   :  { %3206 = vmatprep.subr.bf16.mxu1 %v5100_v61 }
 0x990   :  { %3207 = vmatpush1.bf16.msra.mxu1 %v5108_v23 }
 0x991   :  { %3208 = vmatprep.subr.bf16.mxu1 %v5113_v28 }
 0x994   :  { %3209 = vmatpush1.bf16.msra.mxu1 %v5120_v47 }
 0x995   :  { %3210 = vmatprep.subr.bf16.mxu1 %v5125_v36 }
 0x998   :  { %3211 = vmatpush1.bf16.msra.mxu1 %v5132_v54 }
 0x999   :  { %3212 = vmatprep.subr.bf16.mxu1 %v5137_v18  ;;  %v5410_v18 = vld [vmem:[#allocation19_spill] sm:$0xff] }
 0x99c   :  { %3213 = vmatpush1.bf16.msra.mxu1 %v5144_v62 }
 0x99d   :  { %3214 = vmatprep.subr.bf16.mxu1 %v5149_v35 }
 0x9a0   :  { %3215 = vmatpush1.bf16.msra.mxu1 %v5156_v51  ;;  %v5411_v51 = vld [vmem:[#allocation13_spill] sm:$0xff] }
 0x9a1   :  { %3216 = vmatprep.subr.bf16.mxu1 %v5161_v7  ;;  %v5412_v7 = vld [vmem:[#allocation15_spill] sm:$0xff] }
 0x9a4   :  { %3217 = vmatpush1.bf16.msra.mxu1 %v5168_v9  ;;  %v5413_v9 = vld [vmem:[#allocation12_spill] sm:$0xff] }
 0x9a5   :  { %3218 = vmatprep.subr.bf16.mxu1 %v5173_v6 }
 0x9a8   :  { %3219 = vmatpush1.bf16.msra.mxu1 %v5408_v43 }
 0x9a9   :  { %4000 = vmatprep.subr.bf16.mxu1 %v5378_v0 }
 0xa2b   :  { %v2758_v49 = vpop.f32.mrf.mxu1  ;;  %v2799_v27 = vpop.f32.mrf.mxu0 }
 0xa2d   :  { %v2760_v61 = vpop.f32.mrf.mxu1  ;;  %v2801_v23 = vpop.f32.mrf.mxu0 }
 0xa2f   :  { %v2762_v28 = vpop.f32.mrf.mxu1  ;;  %v2803_v24 = vpop.f32.mrf.mxu0 }
 0xa31   :  { %v2763_v47 = vpop.f32.mrf.mxu1  ;;  %v2804_v52 = vpop.f32.mrf.mxu0 }
 0xa32   :  { %v4234_v47 = vld [vmem:[#allocation5 + $0x128] ss:$20 sps:$4 sm:$0xff]  }
 0xa4b   :  { %v2840_v36 = vpop.f32.mrf.mxu1 }
 0xa4c   :  { %v2846_v54 = vadd.f32 %v2840_v36, %v5409_v57  ;;  %v4235_v36 = vld [vmem:[#allocation5 + $0x100] ss:$20 sps:$4 sm:$0xff]  }
 0xa4d   :  { %v3978_v55 = vpop.f32.mrf.mxu1 }
 0xa4e   :  { %v5253_v39 = vadd.f32 %v5410_v18, %v2846_v54  ;;  %v4237_v54 = vld [vmem:[#allocation5 + $0xb0] ss:$20 sps:$4 sm:$0xff]   ;;  %v4238_v55 = vld [vmem:[#allocation5 + $0x88] ss:$20 sps:$4 sm:$0xff]  }
 0xa4f   :  { %v2843_v62 = vpop.f32.mrf.mxu1 }
 0xa50   :  { %2863 = vperm.xlu0 %4038, %v5253_v39   ;;  %2855 = vperm.xlu1 %4041, %v5253_v39   ;;  %v4239_v62 = vld [vmem:[#allocation5 + $0x60] ss:$20 sps:$4 sm:$0xff]  }
 0xa51   :  { %v3979_v37 = vpop.f32.mrf.mxu1 }
 0xa52   :  { %v4240_v37 = vld [vmem:[#allocation5 + $0x38] ss:$20 sps:$4 sm:$0xff]  }
 0xacb   :  { %v2864_v35 = vpop.permute.xlu0 %2863  ;;  %v2856_v34 = vpop.permute.xlu1 %2855 }
 0xacc   :  { %v2866_v3 = vmul.f32 %v2864_v35, %v5411_v51  ;;  %v2867_v21 = vmul.f32 %v2864_v35, %v5412_v7  ;;  %v2858_v2 = vmul.f32 %v2856_v34, %v5413_v9  ;;  %v2859_v6 = vmul.f32 %v2856_v34, %v5382_v25 }
 0xacd   :  { %v2868_v31 = vmul.f32 %v2864_v35, %v4695_v60  ;;  %v2860_v5 = vmul.f32 %v2856_v34, %v4693_v59  ;;  %v2869_v15 = vmul.f32 %v2864_v35, %v4705_v44  ;;  %v2861_v19 = vmul.f32 %v2856_v34, %v4703_v48  ;;  %v4241_v35 = vld [vmem:[#allocation5 + $0x10] ss:$20 sps:$4 sm:$0xff]  }
 0xace   :  { %v2870_v10 = vadd.f32 %v2866_v3, %v2858_v2  ;;  %v2871_v38 = vadd.f32 %v2867_v21, %v2859_v6 }
 0xacf   :  { %v2872_v16 = vadd.f32 %v2868_v31, %v2860_v5  ;;  %v2873_v53 = vadd.f32 %v2869_v15, %v2861_v19  ;;  %v5416_v15 = vld [vmem:[#allocation18_spill] sm:$0xff] }
 0xad0   :  { %v2874_v30 = vadd.f32 %v2870_v10, %v2758_v49  ;;  %v2875_v4 = vadd.f32 %v2871_v38, %v2760_v61  ;;  %v4242_v19 = vld [vmem:[#allocation5 + $0x128] ss:$20 sps:$4 sm:$0xff]  }
 0xad1   :  { %v2876_v26 = vadd.f32 %v2872_v16, %v2799_v27  ;;  %v2877_v17 = vadd.f32 %v2873_v53, %v2801_v23  ;;  %v4244_v53 = vld [vmem:[#allocation5 + $0xd8] ss:$20 sps:$4 sm:$0xff]  }
 0xad2   :  { %v2878_v13 = vadd.f32 %v2874_v30, %v4691_v56  ;;  %v2879_v32 = vadd.f32 %v2875_v4, %v4697_v63 }
 0xad3   :  { %v2880_v33 = vadd.f32 %v2876_v26, %v4707_v58  ;;  %v2881_v20 = vadd.f32 %v2877_v17, %v4712_v42  ;;  %v4243_v26 = vld [vmem:[#allocation5 + $0x100] ss:$20 sps:$4 sm:$0xff]  }
 0xad4   :  { %v3734_v11 = vmul.f32 -1.442695, %v2878_v13  ;;  %v3735_v22 = vmul.f32 -1.442695, %v2879_v32  ;;  %v4247_v17 = vld [vmem:[#allocation5 + $0x60] ss:$20 sps:$4 sm:$0xff]  }
 0xad5   :  { %v3736_v29 = vmul.f32 -1.442695, %v2880_v33  ;;  %v4246_v33 = vld [vmem:[#allocation5 + $0x88] ss:$20 sps:$4 sm:$0xff]  }
 0xad6   :  { %4346 = vpow2.f32 %v3734_v11  ;;  %v5414_v11 = vld [vmem:[#allocation17_spill] sm:$0xff] }
 0xad7   :  { %4348 = vpow2.f32 %v3735_v22  ;;  %v5415_v22 = vld [vmem:[#allocation14_spill] sm:$0xff] }
 0xad8   :  { %4350 = vpow2.f32 %v3736_v29  ;;  %v4249_v29 = vld [vmem:[#allocation5 + $0x10] ss:$20 sps:$4 sm:$0xff]  }
 0xad9   :  { %4352 = vtanh.f32 %v2881_v20 }
 0xae3   :  { %v4347_v40 = vpop.eup %4346 }
 0xae4   :  { %v4349_v41 = vpop.eup %4348  ;;  %v2891_v1 = vadd.f32 1.0, %v4347_v40 }
 0xae5   :  { %v2892_v12 = vadd.f32 1.0, %v4349_v41  ;;  %v4351_v46 = vpop.eup %4350 }
 0xae6   :  { %4354 = vrcp.f32 %v2891_v1  ;;  %v4353_v45 = vpop.eup %4352  ;;  %v2893_v43 = vadd.f32 1.0, %v4351_v46 }
 0xae7   :  { %4356 = vrcp.f32 %v2892_v12 }
 0xae8   :  { %4358 = vrcp.f32 %v2893_v43 }
 0xaf3   :  { %v4355_v8 = vpop.eup %4354 }
 0xaf4   :  { %v4357_v14 = vpop.eup %4356  ;;  %v2902_v49 = vmul.f32 %v4355_v8, %v4353_v45 }
 0xaf5   :  { %v2901_v27 = vmul.f32 %v4357_v14, %v5204_v50  ;;  %v4359_v23 = vpop.eup %4358  ;;  %v4236_v50 = vld [vmem:[#allocation5 + $0xd8] ss:$20 sps:$4 sm:$0xff]  }
 0xaf7   :  { %v5270_v61 = vadd.f32 %v2902_v49, %v2901_v27 }
 0xaf9   :  { %4360 = vtanh.f32 %v5270_v61 }
 0xb06   :  { %v4361_v28 = vpop.eup %4360 }
 0xb07   :  { %v2905_v24 = vmul.f32 %v4361_v28, %v4359_v23 }
 0xb09   :  { %v2906_v52 = vpack.c.bf16 %v2905_v24, %v2905_v24 }
 0xb0b   :  { %3196 = vmatmul.mubr.bf16.vlgmr.msra.gmra.mxu0 %v2906_v52  ;;  %3237 = vmatmul.mubr.bf16.vlgmr.msra.gmra.mxu1 %v2906_v52 }
 0xb0c   :  { %3981 = vmatpush3.bf16.msra.mxu0 %v4234_v47  ;;  %3996 = vmatprep.mubr.msk.bf16.mxu0 %vm4473_vm0, %v5378_v0 }
 0xb0d   :  { %3982 = vmatprep.subr.bf16.mxu0 %v5378_v0  ;;  %4016 = vmatprep.mubr.msk.bf16.mxu1 %vm4473_vm0, %v5378_v0 }
 0xb0e   :  { %4001 = vmatpush3.bf16.msra.mxu1 %v4242_v19 }
 0xb0f   :  { %4002 = vmatprep.subr.bf16.mxu1 %v5378_v0 }
 0xb10   :  { %3983 = vmatpush3.bf16.msra.mxu0 %v4235_v36 }
 0xb11   :  { %3984 = vmatprep.subr.bf16.mxu0 %v5378_v0 }
 0xb12   :  { %4003 = vmatpush3.bf16.msra.mxu1 %v4243_v26 }
 0xb13   :  { %4004 = vmatprep.subr.bf16.mxu1 %v5378_v0 }
 0xb14   :  { %3985 = vmatpush3.bf16.msra.mxu0 %v4236_v50 }
 0xb15   :  { %3986 = vmatprep.subr.bf16.mxu0 %v5378_v0 }
 0xb16   :  { %4005 = vmatpush3.bf16.msra.mxu1 %v4244_v53 }
 0xb17   :  { %4006 = vmatprep.subr.bf16.mxu1 %v5378_v0 }
 0xb18   :  { %3987 = vmatpush3.bf16.msra.mxu0 %v4237_v54 }
 0xb19   :  { %3988 = vmatprep.subr.bf16.mxu0 %v5378_v0 }
 0xb1c   :  { %3989 = vmatpush3.bf16.msra.mxu0 %v4238_v55 }
 0xb1d   :  { %3990 = vmatprep.subr.bf16.mxu0 %v5378_v0 }
 0xb20   :  { %3991 = vmatpush3.bf16.msra.mxu0 %v4239_v62 }
 0xb21   :  { %3992 = vmatprep.subr.bf16.mxu0 %v5378_v0 }
 0xb24   :  { %3993 = vmatpush3.bf16.msra.mxu0 %v4240_v37 }
 0xb25   :  { %3994 = vmatprep.subr.bf16.mxu0 %v5378_v0 }
 0xb28   :  { %3995 = vmatpush3.bf16.msra.mxu0 %v4241_v35 }
 0xb2b   :  { %3997 = vmatmul.mubr.bf16.vlgmr.msra.gmra.mxu0 %v2906_v52 }
 0xbcb   :  { %v5284_v34 = vpop.f32.mrf.mxu0  ;;  %v5286_v3 = vpop.f32.mrf.mxu1 }
 0xbcd   :  { %v5288_v21 = vpop.f32.mrf.mxu0  ;;  %v5290_v2 = vpop.f32.mrf.mxu1 }
 0xbcf   :  { %v3201_v6 = vpop.f32.mrf.mxu0  ;;  %v3242_v10 = vpop.f32.mrf.mxu1 }
 0xbd1   :  { %v3202_v38 = vpop.f32.mrf.mxu0  ;;  %v3243_v31 = vpop.f32.mrf.mxu1 }
 0xbeb   :  { %v3279_v5 = vpop.f32.mrf.mxu0 }
 0xbec   :  { %v3285_v30 = vadd.f32 %v3279_v5, %v5253_v39 }
 0xbed   :  { %v3998_v4 = vpop.f32.mrf.mxu0 }
 0xbee   :  { %v5294_v13 = vadd.f32 %v5410_v18, %v3285_v30 }
 0xbef   :  { %v3282_v32 = vpop.f32.mrf.mxu0 }
 0xbf0   :  { %3302 = vperm.xlu0 %4038, %v5294_v13   ;;  %3294 = vperm.xlu1 %4041, %v5294_v13  }
 0xbf1   :  { %v3999_v16 = vpop.f32.mrf.mxu0 }
 0xbf4   :  { %1532 = vrot.lane.b32.xlu0 %v5414_v11, %s4474_s4  ;;  %1093 = vrot.lane.b32.xlu1 %v5415_v22, %s4475_s18 }
 0xbf8   :  { %2410 = vrot.lane.b32.xlu0 %v5409_v57, %s4476_s19  ;;  %1971 = vrot.lane.b32.xlu1 %v5416_v15, %s4477_s20  ;;  %v4245_v57 = vld [vmem:[#allocation5 + $0xb0] ss:$20 sps:$4 sm:$0xff]  }
 0xbf9   :  { %4007 = vmatpush3.bf16.msra.mxu1 %v4245_v57 }
 0xbfa   :  { %4008 = vmatprep.subr.bf16.mxu1 %v5378_v0 }
 0xbfc   :  { %3288 = vrot.lane.b32.xlu0 %v5294_v13, %s4478_s21  ;;  %2849 = vrot.lane.b32.xlu1 %v5253_v39, %s4479_s22  ;;  %v4248_v39 = vld [vmem:[#allocation5 + $0x38] ss:$20 sps:$4 sm:$0xff]  }
 0xbfd   :  { %4009 = vmatpush3.bf16.msra.mxu1 %v4246_v33 }
 0xbfe   :  { %4010 = vmatprep.subr.bf16.mxu1 %v5378_v0 }
 0xc01   :  { %4011 = vmatpush3.bf16.msra.mxu1 %v4247_v17 }
 0xc02   :  { %4012 = vmatprep.subr.bf16.mxu1 %v5378_v0 }
 0xc05   :  { %4013 = vmatpush3.bf16.msra.mxu1 %v4248_v39 }
 0xc06   :  { %4014 = vmatprep.subr.bf16.mxu1 %v5378_v0 }
 0xc09   :  { %4015 = vmatpush3.bf16.msra.mxu1 %v4249_v29 }
 0xc6b   :  { %v3303_v20 = vpop.permute.xlu0 %3302  ;;  %v3295_v40 = vpop.permute.xlu1 %3294 }
 0xc6c   :  { %v3305_v41 = vmul.f32 %v3303_v20, %v5411_v51  ;;  %v3306_v1 = vmul.f32 %v3303_v20, %v5412_v7  ;;  %v3297_v12 = vmul.f32 %v3295_v40, %v5413_v9  ;;  %v3298_v46 = vmul.f32 %v3295_v40, %v5382_v25 }
 0xc6d   :  { %v3307_v0 = vmul.f32 %v3303_v20, %v4695_v60  ;;  %v3299_v49 = vmul.f32 %v3295_v40, %v4693_v59  ;;  %v3308_v59 = vmul.f32 %v3303_v20, %v4705_v44  ;;  %v3300_v60 = vmul.f32 %v3295_v40, %v4703_v48 }
 0xc6e   :  { %v3309_v45 = vadd.f32 %v3305_v41, %v3297_v12  ;;  %v3310_v8 = vadd.f32 %v3306_v1, %v3298_v46 }
 0xc6f   :  { %v1533_v14 = vpop.permute.xlu0 %1532  ;;  %v1094_v43 = vpop.permute.xlu1 %1093  ;;  %v3311_v28 = vadd.f32 %v3307_v0, %v3299_v49 }
 0xc70   :  { %1097 = vst.msk [vmem:[#allocation8] sm:$0xff] %vm1096_vm2, %v1094_v43  ;;  %v3313_v51 = vadd.f32 %v3309_v45, %v5284_v34  ;;  %v3314_v7 = vadd.f32 %v3310_v8, %v5288_v21 }
 0xc71   :  { %1536 = vst.msk [vmem:[#allocation8] sm:$0xff] %vm1535_vm3, %v1533_v14 }
 0xc72   :  { %v3317_v25 = vadd.f32 %v3313_v51, %v4691_v56  ;;  %v3318_v9 = vadd.f32 %v3314_v7, %v4697_v63  ;;  %v3315_v56 = vadd.f32 %v3311_v28, %v5286_v3  ;;  %v3312_v63 = vadd.f32 %v3308_v59, %v3300_v60 }
 0xc73   :  { %v2411_v27 = vpop.permute.xlu0 %2410  ;;  %v1972_v23 = vpop.permute.xlu1 %1971 }
 0xc74   :  { %1975 = vst.msk [vmem:[#allocation8] sm:$0xff] %vm1974_vm4, %v1972_v23  ;;  %v3777_v24 = vmul.f32 -1.442695, %v3317_v25  ;;  %v3778_v47 = vmul.f32 -1.442695, %v3318_v9  ;;  %v3319_v50 = vadd.f32 %v3315_v56, %v4707_v58  ;;  %v3316_v54 = vadd.f32 %v3312_v63, %v5290_v2 }
 0xc75   :  { %2414 = vst.msk [vmem:[#allocation8] sm:$0xff] %vm2413_vm5, %v2411_v27 }
 0xc76   :  { %4362 = vpow2.f32 %v3777_v24  ;;  %v3779_v55 = vmul.f32 -1.442695, %v3319_v50  ;;  %v3320_v62 = vadd.f32 %v3316_v54, %v4712_v42 }
 0xc77   :  { %v3289_v52 = vpop.permute.xlu0 %3288  ;;  %v2850_v36 = vpop.permute.xlu1 %2849  ;;  %4364 = vpow2.f32 %v3778_v47 }
 0xc78   :  { %2853 = vst.msk [vmem:[#allocation8] sm:$0xff] %vm2852_vm6, %v2850_v36  ;;  %4366 = vpow2.f32 %v3779_v55 }
 0xc79   :  { %3292 = vst.msk [vmem:[#allocation8] sm:$0xff] %vm3291_vm7, %v3289_v52  ;;  %4368 = vtanh.f32 %v3320_v62 }
 0xc83   :  { %v4363_v44 = vpop.eup %4362 }
 0xc84   :  { %v4365_v37 = vpop.eup %4364  ;;  %v3330_v48 = vadd.f32 1.0, %v4363_v44 }
 0xc85   :  { %v3331_v35 = vadd.f32 1.0, %v4365_v37  ;;  %v4367_v34 = vpop.eup %4366 }
 0xc86   :  { %4370 = vrcp.f32 %v3330_v48  ;;  %v4369_v21 = vpop.eup %4368  ;;  %v3332_v10 = vadd.f32 1.0, %v4367_v34 }
 0xc87   :  { %4372 = vrcp.f32 %v3331_v35 }
 0xc88   :  { %4374 = vrcp.f32 %v3332_v10 }
 0xc93   :  { %v4371_v3 = vpop.eup %4370 }
 0xc94   :  { %v4373_v6 = vpop.eup %4372  ;;  %v3341_v38 = vmul.f32 %v4371_v3, %v4369_v21 }
 0xc95   :  { %v3340_v58 = vmul.f32 %v4373_v6, %v5270_v61  ;;  %v4375_v42 = vpop.eup %4374 }
 0xc97   :  { %v3342_v2 = vadd.f32 %v3341_v38, %v3340_v58 }
 0xc99   :  { %4376 = vtanh.f32 %v3342_v2 }
 0xca6   :  { %v4377_v31 = vpop.eup %4376 }
 0xca7   :  { %v3344_v5 = vmul.f32 %v4377_v31, %v4375_v42 }
 0xca9   :  { %v3345_v30 = vpack.c.bf16 %v3344_v5, %v3344_v5 }
 0xcab   :  { %4017 = vmatmul.mubr.bf16.vlgmr.msra.gmra.mxu1 %v3345_v30 }
 0xd6b   :  { %v3444_v4 = vpop.f32.mrf.mxu1 }
 0xd6c   :  { %v3450_v32 = vadd.f32 %v3444_v4, %v5294_v13 }
 0xd6d   :  { %v4018_v16 = vpop.f32.mrf.mxu1 }
 0xd6e   :  { %v3451_v11 = vadd.f32 %v5410_v18, %v3450_v32 }
 0xd6f   :  { %v3447_v22 = vpop.f32.mrf.mxu1 }
 0xd70   :  { %3453 = vrot.lane.b32.xlu1 %v3451_v11, %s4480_s23 }
 0xd71   :  { %v4019_v15 = vpop.f32.mrf.mxu1 }
 0xde2   :  { %v3454_v61 = vpop.permute.xlu1 %3453 }
 0xde3   :  { %3457 = vst.msk [vmem:[#allocation8] sm:$0xff] %vm3456_vm8, %v3454_v61 }
 0xde4   :  { %4450 = shalt.err (!%p4447_p5)
}
 0xde5   :  { %3467 = dma.vmem_to_hbm [thread:$0]  %s3465_s25, 128, %s5339_s6, [#allocation4]  }
 0xde6   :  { %4463 = dma.done.wait [#allocation4], 128  }
 0xde7   :  { %4464 = vsyncadd [#allocation4], 4294967168 }
 0xde8   :  { %3471 = vsyncpa [#allocation3], 1 }
 0xde9   :  { %3472 = vsyncpa [#allocation6], 1 }
 0xdea   :  { %3473 = vsyncpa [#allocation4], 1 }

</bundles_post_ra>
